<compile_context>
chip_gen: v7x
topology: tpu7x:2x2x1
jax: 0.10.0
libtpu: 0.0.40
codegen_flags: <defaults>
</compile_context>

<pallas_src>
import numpy as np
import jax
import jax.numpy as jnp
from jax import lax
from jax.experimental import pallas as pl
from jax.experimental.pallas import tpu as pltpu  # noqa: F401  (kept for TPU-specific params if needed)

# ----------------------- static configuration -----------------------
B = 4            # batch
S = 8            # sequence length
R = 2            # number_rooms
F = 6            # total features per timestep
F_IN = 4         # per-room inputs_D width
H_IN = 32        # input_nn_hidden_sizes[-1]
H = 32           # lstm_hidden_size
H_OUT = 32       # output_nn_hidden_sizes[-1]

TEMPERATURE_COLUMN = [0, 1]      # must equal room indices (implicit PCNN assumption)
POWER_COLUMN = [2, 3]
OUT_COLUMN = 4
CASE_COLUMN = 5
INPUTS_D = [[0, 2, 4, 5], [1, 3, 4, 5]]
OUTSIDE_WALLS = [0, 1]
NEIGHBORING_ROOMS = [(0, 1)]
N_NB = len(NEIGHBORING_ROOMS)
DIVISION_FACTOR = 10.0
EPS = 1e-3
LN_EPS = 1e-5

TEMPERATURE_MIN = np.array([15.0, 15.0], np.float32)
TEMPERATURE_RANGE = np.array([15.0, 15.0], np.float32)
INIT_A = np.array([1e-3, 1e-3], np.float32)
INIT_B = np.array([1e-4, 1e-4], np.float32)
INIT_C1 = np.array([1e-4], np.float32)
INIT_C2 = np.array([1e-4], np.float32)
INIT_D = np.array([1e-3, 1e-3], np.float32)

# rows of the small-parameter slab (R, 8, 128)
ROW_B_IN, ROW_B_LSTM, ROW_GAMMA, ROW_BETA, ROW_B1, ROW_W2, ROW_B2 = range(7)


# ----------------------- parameters (deterministic) -----------------------
def xavier_normal(key, shape):
    fan_in, fan_out = shape[-2], shape[-1]
    std = np.sqrt(2.0 / (fan_in + fan_out))
    return jax.random.normal(key, shape, jnp.float32) * std


def init_params(key):
    keys = jax.random.split(key, 5 * R)
    W_in = jnp.stack([xavier_normal(keys[5 * r + 0], (F_IN, H_IN)) for r in range(R)])
    # gate column layout: [i | f | o | g] (sigmoid gates first 3*H lanes, tanh gate last H)
    Wih = jnp.stack([xavier_normal(keys[5 * r + 1], (H_IN, 4 * H)) for r in range(R)])
    Whh = jnp.stack([xavier_normal(keys[5 * r + 2], (H, 4 * H)) for r in range(R)])
    W1 = jnp.stack([xavier_normal(keys[5 * r + 3], (H, H_OUT)) for r in range(R)])
    W2 = jnp.stack([xavier_normal(keys[5 * r + 4], (1, H_OUT)) for r in range(R)])
    return dict(
        W_in=W_in, b_in=jnp.zeros((R, 1, H_IN), jnp.float32),
        Wih=Wih, Whh=Whh, b_lstm=jnp.zeros((R, 1, 4 * H), jnp.float32),
        gamma=jnp.ones((R, 1, H), jnp.float32), beta=jnp.zeros((R, 1, H), jnp.float32),
        W1=W1, b1=jnp.zeros((R, 1, H_OUT), jnp.float32),
        W2=W2, b2=jnp.zeros((R, 1, 1), jnp.float32),
        log_a=jnp.zeros((R,), jnp.float32),
        log_b=jnp.zeros((len(OUTSIDE_WALLS),), jnp.float32),
        log_c=jnp.zeros((N_NB,), jnp.float32),
        log_d=jnp.zeros((R,), jnp.float32),
    )


# ----------------------- single fused kernel: D modules + physics -----------------------
def pcnn_kernel(x_ref, win_ref, bigw_ref, small_ref, phys_ref, ppar_ref,
                tde_ref, hc_ref):
    # x_ref:     (R, S*B, F_IN) f32   per-room inputs, time-major within each room
    # win_ref:   (R, F_IN, H_IN) bf16
    # bigw_ref:  (R, H, 4H+4H+H_OUT) bf16  = [Wih | Whh | W1]
    # small_ref: (R, 8, 128) f32      rows = [b_in, b_lstm, gamma, beta, b1, w2, b2]
    # phys_ref:  (4, B, R) f32        rows = [x_temp, power, last_E, (x_out|case)]
    # ppar_ref:  (8, R) f32           rows = [a, d, b_full, range, min, Cmat[0], Cmat[1], -]
    d_cols = []
    for r in range(R):                              # static unroll over rooms (independent chains)
        xr = x_ref[r].astype(jnp.bfloat16)          # (S*B, F_IN)
        win = win_ref[r]                            # (F_IN, H_IN)
        bigw = bigw_ref[r]                          # (H, 288)
        wih = bigw[:, 0:4 * H]
        whh = bigw[:, 4 * H:8 * H]
        w1 = bigw[:, 8 * H:8 * H + H_OUT]
        sm = small_ref[r]                           # (8, 128)
        b_in = sm[ROW_B_IN:ROW_B_IN + 1, 0:H_IN]
        b_lstm = sm[ROW_B_LSTM:ROW_B_LSTM + 1, 0:4 * H]
        gamma = sm[ROW_GAMMA:ROW_GAMMA + 1, 0:H]
        beta = sm[ROW_BETA:ROW_BETA + 1, 0:H]
        b1 = sm[ROW_B1:ROW_B1 + 1, 0:H_OUT]
        w2 = sm[ROW_W2:ROW_W2 + 1, 0:H_OUT]
        b2 = sm[ROW_B2:ROW_B2 + 1, 0:1]

        # ---- hoisted, time-invariant matmuls (input NN + x-side gate projection) ----
        emb = jnp.maximum(
            jnp.dot(xr, win, preferred_element_type=jnp.float32) + b_in, 0.0)       # (S*B, H_IN)
        gx = jnp.dot(emb.astype(jnp.bfloat16), wih,
                     preferred_element_type=jnp.float32) + b_lstm                   # (S*B, 4H)

        # ---- serial LSTM recurrence: only h @ Whh + elementwise per step ----
        h = jnp.zeros((B, H), jnp.float32)
        c = jnp.zeros((B, H), jnp.float32)
        for t in range(S):                           # static unroll over sequence
            gates = gx[t * B:(t + 1) * B, :] + jnp.dot(
                h.astype(jnp.bfloat16), whh, preferred_element_type=jnp.float32)
            sig = jax.nn.sigmoid(gates[:, 0:3 * H])  # gate layout [i, f, o, g]
            i_g = sig[:, 0:H]
            f_g = sig[:, H:2 * H]
            o_g = sig[:, 2 * H:3 * H]
            g_g = jnp.tanh(gates[:, 3 * H:4 * H])
            c = f_g * c + i_g * g_g
            h = o_g * jnp.tanh(c)

        # ---- LayerNorm (biased variance, eps=1e-5) + output NN ----
        mean = jnp.mean(h, axis=-1, keepdims=True)
        var = jnp.mean((h - mean) ** 2, axis=-1, keepdims=True)
        y = (h - mean) * lax.rsqrt(var + LN_EPS) * gamma + beta
        t1 = jnp.tanh(jnp.dot(y.astype(jnp.bfloat16), w1,
                              preferred_element_type=jnp.float32) + b1)
        t2 = jnp.tanh(jnp.sum(t1 * w2, axis=1, keepdims=True) + b2)                 # (B, 1)

        d_cols.append(t2)
        hc_ref[r] = jnp.concatenate([h, c], axis=1)  # packed (B, 2H) per room

    d_raw = jnp.concatenate(d_cols, axis=1)          # (B, R)

    # ---- physics epilogue: energy accumulator E and T = D + E ----
    x_temp = phys_ref[0]                             # (B, R)  x[:, -1, temperature_column]
    power = phys_ref[1]                              # (B, R)
    last_E = phys_ref[2]                             # (B, R)
    oc = phys_ref[3]                                 # (B, R): col0 = x_out, col1 = case
    x_out = oc[:, 0:1]
    case = oc[:, 1:2]
    pp = ppar_ref[...]                               # (8, R)
    wa = pp[0:1, :]
    wd = pp[1:2, :]
    wb = pp[2:3, :]                                  # exp(log_b)*init_b scattered to wall rooms
    rng = pp[3:4, :]
    mn = pp[4:5, :]

    # D = output_nn / division_factor + room temperature input
    D = d_raw * (1.0 / DIVISION_FACTOR) + x_temp

    # unnormalized room temperatures
    T_un = (x_temp + last_E - 0.1) / 0.8 * rng + mn

    # heat losses to the outside (wb is zero for non-outside-wall rooms)
    E = last_E - wb * (T_un - x_out)

    # neighbour exchange folded into a precomputed (R, R) coupling matrix:  E += T_un @ Cmat
    for r in range(R):
        E = E + T_un[:, r:r + 1] * pp[5 + r:6 + r, :]

    # heating / cooling power contributions (row masks replace boolean batch indexing)
    heat_p = jnp.where(power > EPS, power, 0.0)
    cool_p = jnp.where(power < -EPS, power, 0.0)
    heating = jnp.max(jnp.where(power > EPS, 1.0, 0.0), axis=1, keepdims=True)
    cooling = jnp.max(jnp.where(power < -EPS, 1.0, 0.0), axis=1, keepdims=True)
    E = E + heating * (heat_p * wa) + cooling * (cool_p * wd)

    out = jnp.where(case < 1e-6, 0.0, D + E)
    tde_ref[...] = jnp.concatenate([out, D, E], axis=1)   # (B, 3R)


def run_pcnn_kernel(x_rooms, w_in_bf, big_w, smalls, phys, ppar):
    out_shapes = (
        jax.ShapeDtypeStruct((B, 3 * R), jnp.float32),    # [out | D | E]
        jax.ShapeDtypeStruct((R, B, 2 * H), jnp.float32),  # [h | c] per room
    )
    # no grid: everything fits trivially in VMEM on v5e/v6e/v7x; single launch, single set of DMAs.
    return pl.pallas_call(pcnn_kernel, out_shape=out_shapes)(
        x_rooms, w_in_bf, big_w, smalls, phys, ppar)


# ----------------------- full forward (states=None path) -----------------------
def m_pcnn_forward(x, params, warm_start=False):
    """x: (B, S, F) float32. Fresh start (states=None): last_D = last_E = 0."""
    last_D = jnp.zeros((B, R), jnp.float32)
    last_E = jnp.zeros((B, R), jnp.float32)
    tcol = jnp.array(TEMPERATURE_COLUMN)
    if not warm_start:
        x = x.at[:, -1, tcol].set(last_D)
    else:
        # TODO(synk): warm_start path not covered by the reference check below.
        x = x.at[:, -1, tcol].set(x[:, -1, tcol] - last_E)

    # per-room inputs packed once: (R, S*B, F_IN), time-major within each room
    x_rooms = jnp.stack(
        [jnp.transpose(x[:, :, jnp.array(cols)], (1, 0, 2)).reshape(S * B, F_IN)
         for cols in INPUTS_D], axis=0)

    # physics inputs: (4, B, R)
    x_temp = x[:, -1, tcol]                                    # (B, R)
    power = x[:, -1, jnp.array(POWER_COLUMN)]                  # (B, R)
    oc = jnp.stack([x[:, -1, OUT_COLUMN], x[:, -1, CASE_COLUMN]], axis=1)  # (B, 2) == (B, R)
    phys = jnp.stack([x_temp, power, last_E, oc], axis=0)

    # weight slabs (bf16 into the MXU, f32 accumulation inside the kernel)
    w_in_bf = params['W_in'].astype(jnp.bfloat16)                                   # (R, F_IN, H_IN)
    big_w = jnp.concatenate([params['Wih'], params['Whh'], params['W1']],
                            axis=-1).astype(jnp.bfloat16)                           # (R, H, 288)

    smalls = jnp.zeros((R, 8, 128), jnp.float32)
    smalls = smalls.at[:, ROW_B_IN, :H_IN].set(params['b_in'][:, 0, :])
    smalls = smalls.at[:, ROW_B_LSTM, :4 * H].set(params['b_lstm'][:, 0, :])
    smalls = smalls.at[:, ROW_GAMMA, :H].set(params['gamma'][:, 0, :])
    smalls = smalls.at[:, ROW_BETA, :H].set(params['beta'][:, 0, :])
    smalls = smalls.at[:, ROW_B1, :H_OUT].set(params['b1'][:, 0, :])
    smalls = smalls.at[:, ROW_W2, :H_OUT].set(params['W2'][:, 0, :])
    smalls = smalls.at[:, ROW_B2, :1].set(params['b2'][:, 0, :])

    # physics parameter slab (8, R)
    wa = jnp.exp(params['log_a']) * jnp.asarray(INIT_A)
    wd = jnp.exp(params['log_d']) * jnp.asarray(INIT_D)
    wb_full = jnp.zeros((R,), jnp.float32).at[jnp.array(OUTSIDE_WALLS)].set(
        jnp.exp(params['log_b']) * jnp.asarray(INIT_B))
    wc = jnp.exp(params['log_c'])                              # (N_NB,)
    pdiff = np.zeros((R, N_NB), np.float32)
    scat = np.zeros((N_NB, R), np.float32)
    for i, (r1, r2) in enumerate(NEIGHBORING_ROOMS):
        pdiff[r1, i] = 1.0
        pdiff[r2, i] = -1.0
        scat[i, r1] = -INIT_C1[i]
        scat[i, r2] = INIT_C2[i]
    cmat = jnp.asarray(pdiff) @ (wc[:, None] * jnp.asarray(scat))   # (R, R)
    ppar = jnp.zeros((8, R), jnp.float32)
    ppar = ppar.at[0].set(wa).at[1].set(wd).at[2].set(wb_full)
    ppar = ppar.at[3].set(jnp.asarray(TEMPERATURE_RANGE)).at[4].set(jnp.asarray(TEMPERATURE_MIN))
    ppar = ppar.at[5:5 + R].set(cmat)

    tde, hc = run_pcnn_kernel(x_rooms, w_in_bf, big_w, smalls, phys, ppar)
    out = tde[:, 0:R]
    D = tde[:, R:2 * R]
    E = tde[:, 2 * R:3 * R]
    h = [hc[r, :, :H][None] for r in range(R)]   # (num_layers=1, B, H) per room
    c = [hc[r, :, H:][None] for r in range(R)]
    return out, D, E, (h, c)


m_pcnn_forward_jit = jax.jit(m_pcnn_forward, static_argnames=("warm_start",))


# ----------------------- pure-JAX reference (for verification) -----------------------
def reference_forward(x, p):
    last_D = jnp.zeros((B, R), jnp.float32)
    last_E = jnp.zeros((B, R), jnp.float32)
    tcol = jnp.array(TEMPERATURE_COLUMN)
    x = x.at[:, -1, tcol].set(last_D)

    D = jnp.zeros((B, R), jnp.float32)
    for r in range(R):
        xi = x[:, :, jnp.array(INPUTS_D[r])]
        emb = jax.nn.relu(jnp.einsum('bsf,fh->bsh', xi, p['W_in'][r]) + p['b_in'][r])
        h = jnp.zeros((B, H)); c = jnp.zeros((B, H))
        for t in range(S):
            gates = emb[:, t] @ p['Wih'][r] + h @ p['Whh'][r] + p['b_lstm'][r][0]
            # gate layout [i, f, o, g] (same convention as the kernel / init)
            i_g = jax.nn.sigmoid(gates[:, 0:H]); f_g = jax.nn.sigmoid(gates[:, H:2 * H])
            o_g = jax.nn.sigmoid(gates[:, 2 * H:3 * H]); g_g = jnp.tanh(gates[:, 3 * H:4 * H])
            c = f_g * c + i_g * g_g
            h = o_g * jnp.tanh(c)
        mean = jnp.mean(h, -1, keepdims=True)
        var = jnp.mean((h - mean) ** 2, -1, keepdims=True)
        y = (h - mean) / jnp.sqrt(var + LN_EPS) * p['gamma'][r] + p['beta'][r]
        t1 = jnp.tanh(y @ p['W1'][r] + p['b1'][r][0])
        t2 = jnp.tanh(jnp.sum(t1 * p['W2'][r], axis=1, keepdims=True) + p['b2'][r][0])
        D = D.at[:, r].set(t2[:, 0] * (1.0 / DIVISION_FACTOR) + x[:, -1, TEMPERATURE_COLUMN[r]])

    E = last_E
    ow = jnp.array(OUTSIDE_WALLS)
    tc_ow = jnp.array([TEMPERATURE_COLUMN[i] for i in OUTSIDE_WALLS])
    rng = jnp.asarray(TEMPERATURE_RANGE); mn = jnp.asarray(TEMPERATURE_MIN)
    T_ow = (x[:, -1, tc_ow] + last_E[:, ow] - 0.1) / 0.8 * rng[ow] + mn[ow]
    loss = jnp.exp(p['log_b']) * (T_ow - x[:, -1, OUT_COLUMN:OUT_COLUMN + 1]) * jnp.asarray(INIT_B)
    E = E.at[:, ow].add(-loss)

    n1 = jnp.array([a for a, _ in NEIGHBORING_ROOMS])
    n2 = jnp.array([b for _, b in NEIGHBORING_ROOMS])
    T1 = (x[:, -1, n1] + last_E[:, n1] - 0.1) / 0.8 * rng[n1] + mn[n1]
    T2 = (x[:, -1, n2] + last_E[:, n2] - 0.1) / 0.8 * rng[n2] + mn[n2]
    effect = jnp.exp(p['log_c']) * (T1 - T2)
    for i, (r1, r2) in enumerate(NEIGHBORING_ROOMS):
        E = E.at[:, r1].add(-effect[:, i] * INIT_C1[i])
        E = E.at[:, r2].add(effect[:, i] * INIT_C2[i])

    power = x[:, -1, jnp.array(POWER_COLUMN)]
    heating = jnp.any(power > EPS, axis=1, keepdims=True)
    cooling = jnp.any(power < -EPS, axis=1, keepdims=True)
    heat_p = jnp.where(power > EPS, power, 0.0)
    cool_p = jnp.where(power < -EPS, power, 0.0)
    E = E + jnp.where(heating, heat_p * jnp.exp(p['log_a']) * jnp.asarray(INIT_A), 0.0)
    E = E + jnp.where(cooling, cool_p * jnp.exp(p['log_d']) * jnp.asarray(INIT_D), 0.0)

    out = D + E
    out = jnp.where(x[:, -1, CASE_COLUMN:CASE_COLUMN + 1] < 1e-6, 0.0, out)
    return out


# ----------------------- main -----------------------
if __name__ == "__main__":
    key = jax.random.PRNGKey(0)
    pkey, xkey = jax.random.split(key)
    params = init_params(pkey)

    x = jax.random.uniform(xkey, (B, S, F), jnp.float32, 0.1, 0.9)
    # center power so both heating (>eps) and cooling (<-eps) rows appear
    x = x.at[:, :, jnp.array(POWER_COLUMN)].add(-0.5)
    # one batch element with case ~ 0 to exercise the output masking
    x = x.at[0, -1, CASE_COLUMN].set(0.0)

    out, D, E, (h, c) = jax.block_until_ready(m_pcnn_forward_jit(x, params))
    ref = reference_forward(x, params)

    assert out.shape == (B, R)
    assert h[0].shape == (1, B, H) and c[0].shape == (1, B, H)
    np.testing.assert_allclose(np.asarray(out), np.asarray(ref), rtol=2e-2, atol=2e-2)
    print("KERNEL_OK")
</pallas_src>

<mosaic_0001>
module attributes {stable_mosaic.version = 11 : i64} {
  func.func @pcnn_kernel(%arg0: memref<2x32x4xf32, #tpu.memory_space<vmem>>, %arg1: memref<2x4x32xbf16, #tpu.memory_space<vmem>>, %arg2: memref<2x32x288xbf16, #tpu.memory_space<vmem>>, %arg3: memref<2x8x128xf32, #tpu.memory_space<vmem>>, %arg4: memref<4x4x2xf32, #tpu.memory_space<vmem>>, %arg5: memref<8x2xf32, #tpu.memory_space<vmem>>, %arg6: memref<4x6xf32, #tpu.memory_space<vmem>>, %arg7: memref<2x4x64xf32, #tpu.memory_space<vmem>>) attributes {dimension_semantics = [], scalar_prefetch = 0 : i64, scratch_operands = 0 : i64, tpu.core_type = #tpu.core_type<tc>} {
    %c0 = arith.constant 0 : index
    %c0_0 = arith.constant 0 : index
    %c0_1 = arith.constant 0 : index
    %0 = vector.load %arg0[%c0, %c0_0, %c0_1] : memref<2x32x4xf32, #tpu.memory_space<vmem>>, vector<1x32x4xf32>
    %1 = vector.shape_cast %0 : vector<1x32x4xf32> to vector<32x4xf32>
    %2 = arith.truncf %1 : vector<32x4xf32> to vector<32x4xbf16>
    %c0_2 = arith.constant 0 : index
    %c0_3 = arith.constant 0 : index
    %c0_4 = arith.constant 0 : index
    %3 = vector.load %arg1[%c0_2, %c0_3, %c0_4] : memref<2x4x32xbf16, #tpu.memory_space<vmem>>, vector<1x4x32xbf16>
    %4 = vector.shape_cast %3 : vector<1x4x32xbf16> to vector<4x32xbf16>
    %c0_5 = arith.constant 0 : index
    %c0_6 = arith.constant 0 : index
    %c0_7 = arith.constant 0 : index
    %5 = vector.load %arg2[%c0_5, %c0_6, %c0_7] : memref<2x32x288xbf16, #tpu.memory_space<vmem>>, vector<1x32x288xbf16>
    %6 = vector.shape_cast %5 : vector<1x32x288xbf16> to vector<32x288xbf16>
    %7 = vector.extract_strided_slice %6 {offsets = [0, 0], sizes = [32, 128], strides = [1, 1]} : vector<32x288xbf16> to vector<32x128xbf16>
    %8 = vector.extract_strided_slice %6 {offsets = [0, 128], sizes = [32, 128], strides = [1, 1]} : vector<32x288xbf16> to vector<32x128xbf16>
    %9 = vector.extract_strided_slice %6 {offsets = [0, 256], sizes = [32, 32], strides = [1, 1]} : vector<32x288xbf16> to vector<32x32xbf16>
    %c0_8 = arith.constant 0 : index
    %c0_9 = arith.constant 0 : index
    %c0_10 = arith.constant 0 : index
    %10 = vector.load %arg3[%c0_8, %c0_9, %c0_10] : memref<2x8x128xf32, #tpu.memory_space<vmem>>, vector<1x8x128xf32>
    %11 = vector.shape_cast %10 : vector<1x8x128xf32> to vector<8x128xf32>
    %12 = vector.extract_strided_slice %11 {offsets = [0, 0], sizes = [1, 32], strides = [1, 1]} : vector<8x128xf32> to vector<1x32xf32>
    %13 = vector.extract_strided_slice %11 {offsets = [1, 0], sizes = [1, 128], strides = [1, 1]} : vector<8x128xf32> to vector<1x128xf32>
    %14 = vector.extract_strided_slice %11 {offsets = [2, 0], sizes = [1, 32], strides = [1, 1]} : vector<8x128xf32> to vector<1x32xf32>
    %15 = vector.extract_strided_slice %11 {offsets = [3, 0], sizes = [1, 32], strides = [1, 1]} : vector<8x128xf32> to vector<1x32xf32>
    %16 = vector.extract_strided_slice %11 {offsets = [4, 0], sizes = [1, 32], strides = [1, 1]} : vector<8x128xf32> to vector<1x32xf32>
    %17 = vector.extract_strided_slice %11 {offsets = [5, 0], sizes = [1, 32], strides = [1, 1]} : vector<8x128xf32> to vector<1x32xf32>
    %18 = vector.extract_strided_slice %11 {offsets = [6, 0], sizes = [1, 1], strides = [1, 1]} : vector<8x128xf32> to vector<1x1xf32>
    %cst = arith.constant dense<0.000000e+00> : vector<32x32xf32>
    %19 = tpu.matmul %2, %4, %cst {dimension_numbers = #tpu.dot_dimension_numbers<[1], [0], [0], [1], [0, 0, 1, 1], [], []>} : vector<32x4xbf16>, vector<4x32xbf16>, vector<32x32xf32> -> vector<32x32xf32>
    %20 = vector.broadcast %12 : vector<1x32xf32> to vector<32x32xf32>
    %21 = arith.addf %19, %20 : vector<32x32xf32>
    %cst_11 = arith.constant 0.000000e+00 : f32
    %22 = vector.broadcast %cst_11 : f32 to vector<32x32xf32>
    %23 = arith.maximumf %21, %22 : vector<32x32xf32>
    %24 = arith.truncf %23 : vector<32x32xf32> to vector<32x32xbf16>
    %cst_12 = arith.constant dense<0.000000e+00> : vector<32x128xf32>
    %25 = tpu.matmul %24, %7, %cst_12 {dimension_numbers = #tpu.dot_dimension_numbers<[1], [0], [0], [1], [0, 0, 1, 1], [], []>} : vector<32x32xbf16>, vector<32x128xbf16>, vector<32x128xf32> -> vector<32x128xf32>
    %26 = vector.broadcast %13 : vector<1x128xf32> to vector<32x128xf32>
    %27 = arith.addf %25, %26 : vector<32x128xf32>
    %cst_13 = arith.constant 0.000000e+00 : f32
    %28 = vector.broadcast %cst_13 : f32 to vector<4x32xf32>
    %cst_14 = arith.constant 0.000000e+00 : f32
    %29 = vector.broadcast %cst_14 : f32 to vector<4x32xf32>
    %30 = vector.extract_strided_slice %27 {offsets = [0, 0], sizes = [4, 128], strides = [1, 1]} : vector<32x128xf32> to vector<4x128xf32>
    %31 = arith.truncf %28 : vector<4x32xf32> to vector<4x32xbf16>
    %cst_15 = arith.constant dense<0.000000e+00> : vector<4x128xf32>
    %32 = tpu.matmul %31, %8, %cst_15 {dimension_numbers = #tpu.dot_dimension_numbers<[1], [0], [0], [1], [0, 0, 1, 1], [], []>} : vector<4x32xbf16>, vector<32x128xbf16>, vector<4x128xf32> -> vector<4x128xf32>
    %33 = arith.addf %30, %32 : vector<4x128xf32>
    %34 = vector.extract_strided_slice %33 {offsets = [0, 0], sizes = [4, 96], strides = [1, 1]} : vector<4x128xf32> to vector<4x96xf32>
    %35 = arith.negf %34 : vector<4x96xf32>
    %36 = math.exp %35 : vector<4x96xf32>
    %cst_16 = arith.constant 1.000000e+00 : f32
    %37 = vector.broadcast %cst_16 : f32 to vector<4x96xf32>
    %38 = arith.addf %37, %36 : vector<4x96xf32>
    %39 = arith.divf %37, %38 : vector<4x96xf32>
    %40 = vector.extract_strided_slice %39 {offsets = [0, 0], sizes = [4, 32], strides = [1, 1]} : vector<4x96xf32> to vector<4x32xf32>
    %41 = vector.extract_strided_slice %39 {offsets = [0, 32], sizes = [4, 32], strides = [1, 1]} : vector<4x96xf32> to vector<4x32xf32>
    %42 = vector.extract_strided_slice %39 {offsets = [0, 64], sizes = [4, 32], strides = [1, 1]} : vector<4x96xf32> to vector<4x32xf32>
    %43 = vector.extract_strided_slice %33 {offsets = [0, 96], sizes = [4, 32], strides = [1, 1]} : vector<4x128xf32> to vector<4x32xf32>
    %44 = math.tanh %43 : vector<4x32xf32>
    %45 = arith.mulf %41, %29 : vector<4x32xf32>
    %46 = arith.mulf %40, %44 : vector<4x32xf32>
    %47 = arith.addf %45, %46 : vector<4x32xf32>
    %48 = math.tanh %47 : vector<4x32xf32>
    %49 = arith.mulf %42, %48 : vector<4x32xf32>
    %50 = vector.extract_strided_slice %27 {offsets = [4, 0], sizes = [4, 128], strides = [1, 1]} : vector<32x128xf32> to vector<4x128xf32>
    %51 = arith.truncf %49 : vector<4x32xf32> to vector<4x32xbf16>
    %cst_17 = arith.constant dense<0.000000e+00> : vector<4x128xf32>
    %52 = tpu.matmul %51, %8, %cst_17 {dimension_numbers = #tpu.dot_dimension_numbers<[1], [0], [0], [1], [0, 0, 1, 1], [], []>} : vector<4x32xbf16>, vector<32x128xbf16>, vector<4x128xf32> -> vector<4x128xf32>
    %53 = arith.addf %50, %52 : vector<4x128xf32>
    %54 = vector.extract_strided_slice %53 {offsets = [0, 0], sizes = [4, 96], strides = [1, 1]} : vector<4x128xf32> to vector<4x96xf32>
    %55 = arith.negf %54 : vector<4x96xf32>
    %56 = math.exp %55 : vector<4x96xf32>
    %cst_18 = arith.constant 1.000000e+00 : f32
    %57 = vector.broadcast %cst_18 : f32 to vector<4x96xf32>
    %58 = arith.addf %57, %56 : vector<4x96xf32>
    %59 = arith.divf %57, %58 : vector<4x96xf32>
    %60 = vector.extract_strided_slice %59 {offsets = [0, 0], sizes = [4, 32], strides = [1, 1]} : vector<4x96xf32> to vector<4x32xf32>
    %61 = vector.extract_strided_slice %59 {offsets = [0, 32], sizes = [4, 32], strides = [1, 1]} : vector<4x96xf32> to vector<4x32xf32>
    %62 = vector.extract_strided_slice %59 {offsets = [0, 64], sizes = [4, 32], strides = [1, 1]} : vector<4x96xf32> to vector<4x32xf32>
    %63 = vector.extract_strided_slice %53 {offsets = [0, 96], sizes = [4, 32], strides = [1, 1]} : vector<4x128xf32> to vector<4x32xf32>
    %64 = math.tanh %63 : vector<4x32xf32>
    %65 = arith.mulf %61, %47 : vector<4x32xf32>
    %66 = arith.mulf %60, %64 : vector<4x32xf32>
    %67 = arith.addf %65, %66 : vector<4x32xf32>
    %68 = math.tanh %67 : vector<4x32xf32>
    %69 = arith.mulf %62, %68 : vector<4x32xf32>
    %70 = vector.extract_strided_slice %27 {offsets = [8, 0], sizes = [4, 128], strides = [1, 1]} : vector<32x128xf32> to vector<4x128xf32>
    %71 = arith.truncf %69 : vector<4x32xf32> to vector<4x32xbf16>
    %cst_19 = arith.constant dense<0.000000e+00> : vector<4x128xf32>
    %72 = tpu.matmul %71, %8, %cst_19 {dimension_numbers = #tpu.dot_dimension_numbers<[1], [0], [0], [1], [0, 0, 1, 1], [], []>} : vector<4x32xbf16>, vector<32x128xbf16>, vector<4x128xf32> -> vector<4x128xf32>
    %73 = arith.addf %70, %72 : vector<4x128xf32>
    %74 = vector.extract_strided_slice %73 {offsets = [0, 0], sizes = [4, 96], strides = [1, 1]} : vector<4x128xf32> to vector<4x96xf32>
    %75 = arith.negf %74 : vector<4x96xf32>
    %76 = math.exp %75 : vector<4x96xf32>
    %cst_20 = arith.constant 1.000000e+00 : f32
    %77 = vector.broadcast %cst_20 : f32 to vector<4x96xf32>
    %78 = arith.addf %77, %76 : vector<4x96xf32>
    %79 = arith.divf %77, %78 : vector<4x96xf32>
    %80 = vector.extract_strided_slice %79 {offsets = [0, 0], sizes = [4, 32], strides = [1, 1]} : vector<4x96xf32> to vector<4x32xf32>
    %81 = vector.extract_strided_slice %79 {offsets = [0, 32], sizes = [4, 32], strides = [1, 1]} : vector<4x96xf32> to vector<4x32xf32>
    %82 = vector.extract_strided_slice %79 {offsets = [0, 64], sizes = [4, 32], strides = [1, 1]} : vector<4x96xf32> to vector<4x32xf32>
    %83 = vector.extract_strided_slice %73 {offsets = [0, 96], sizes = [4, 32], strides = [1, 1]} : vector<4x128xf32> to vector<4x32xf32>
    %84 = math.tanh %83 : vector<4x32xf32>
    %85 = arith.mulf %81, %67 : vector<4x32xf32>
    %86 = arith.mulf %80, %84 : vector<4x32xf32>
    %87 = arith.addf %85, %86 : vector<4x32xf32>
    %88 = math.tanh %87 : vector<4x32xf32>
    %89 = arith.mulf %82, %88 : vector<4x32xf32>
    %90 = vector.extract_strided_slice %27 {offsets = [12, 0], sizes = [4, 128], strides = [1, 1]} : vector<32x128xf32> to vector<4x128xf32>
    %91 = arith.truncf %89 : vector<4x32xf32> to vector<4x32xbf16>
    %cst_21 = arith.constant dense<0.000000e+00> : vector<4x128xf32>
    %92 = tpu.matmul %91, %8, %cst_21 {dimension_numbers = #tpu.dot_dimension_numbers<[1], [0], [0], [1], [0, 0, 1, 1], [], []>} : vector<4x32xbf16>, vector<32x128xbf16>, vector<4x128xf32> -> vector<4x128xf32>
    %93 = arith.addf %90, %92 : vector<4x128xf32>
    %94 = vector.extract_strided_slice %93 {offsets = [0, 0], sizes = [4, 96], strides = [1, 1]} : vector<4x128xf32> to vector<4x96xf32>
    %95 = arith.negf %94 : vector<4x96xf32>
    %96 = math.exp %95 : vector<4x96xf32>
    %cst_22 = arith.constant 1.000000e+00 : f32
    %97 = vector.broadcast %cst_22 : f32 to vector<4x96xf32>
    %98 = arith.addf %97, %96 : vector<4x96xf32>
    %99 = arith.divf %97, %98 : vector<4x96xf32>
    %100 = vector.extract_strided_slice %99 {offsets = [0, 0], sizes = [4, 32], strides = [1, 1]} : vector<4x96xf32> to vector<4x32xf32>
    %101 = vector.extract_strided_slice %99 {offsets = [0, 32], sizes = [4, 32], strides = [1, 1]} : vector<4x96xf32> to vector<4x32xf32>
    %102 = vector.extract_strided_slice %99 {offsets = [0, 64], sizes = [4, 32], strides = [1, 1]} : vector<4x96xf32> to vector<4x32xf32>
    %103 = vector.extract_strided_slice %93 {offsets = [0, 96], sizes = [4, 32], strides = [1, 1]} : vector<4x128xf32> to vector<4x32xf32>
    %104 = math.tanh %103 : vector<4x32xf32>
    %105 = arith.mulf %101, %87 : vector<4x32xf32>
    %106 = arith.mulf %100, %104 : vector<4x32xf32>
    %107 = arith.addf %105, %106 : vector<4x32xf32>
    %108 = math.tanh %107 : vector<4x32xf32>
    %109 = arith.mulf %102, %108 : vector<4x32xf32>
    %110 = vector.extract_strided_slice %27 {offsets = [16, 0], sizes = [4, 128], strides = [1, 1]} : vector<32x128xf32> to vector<4x128xf32>
    %111 = arith.truncf %109 : vector<4x32xf32> to vector<4x32xbf16>
    %cst_23 = arith.constant dense<0.000000e+00> : vector<4x128xf32>
    %112 = tpu.matmul %111, %8, %cst_23 {dimension_numbers = #tpu.dot_dimension_numbers<[1], [0], [0], [1], [0, 0, 1, 1], [], []>} : vector<4x32xbf16>, vector<32x128xbf16>, vector<4x128xf32> -> vector<4x128xf32>
    %113 = arith.addf %110, %112 : vector<4x128xf32>
    %114 = vector.extract_strided_slice %113 {offsets = [0, 0], sizes = [4, 96], strides = [1, 1]} : vector<4x128xf32> to vector<4x96xf32>
    %115 = arith.negf %114 : vector<4x96xf32>
    %116 = math.exp %115 : vector<4x96xf32>
    %cst_24 = arith.constant 1.000000e+00 : f32
    %117 = vector.broadcast %cst_24 : f32 to vector<4x96xf32>
    %118 = arith.addf %117, %116 : vector<4x96xf32>
    %119 = arith.divf %117, %118 : vector<4x96xf32>
    %120 = vector.extract_strided_slice %119 {offsets = [0, 0], sizes = [4, 32], strides = [1, 1]} : vector<4x96xf32> to vector<4x32xf32>
    %121 = vector.extract_strided_slice %119 {offsets = [0, 32], sizes = [4, 32], strides = [1, 1]} : vector<4x96xf32> to vector<4x32xf32>
    %122 = vector.extract_strided_slice %119 {offsets = [0, 64], sizes = [4, 32], strides = [1, 1]} : vector<4x96xf32> to vector<4x32xf32>
    %123 = vector.extract_strided_slice %113 {offsets = [0, 96], sizes = [4, 32], strides = [1, 1]} : vector<4x128xf32> to vector<4x32xf32>
    %124 = math.tanh %123 : vector<4x32xf32>
    %125 = arith.mulf %121, %107 : vector<4x32xf32>
    %126 = arith.mulf %120, %124 : vector<4x32xf32>
    %127 = arith.addf %125, %126 : vector<4x32xf32>
    %128 = math.tanh %127 : vector<4x32xf32>
    %129 = arith.mulf %122, %128 : vector<4x32xf32>
    %130 = vector.extract_strided_slice %27 {offsets = [20, 0], sizes = [4, 128], strides = [1, 1]} : vector<32x128xf32> to vector<4x128xf32>
    %131 = arith.truncf %129 : vector<4x32xf32> to vector<4x32xbf16>
    %cst_25 = arith.constant dense<0.000000e+00> : vector<4x128xf32>
    %132 = tpu.matmul %131, %8, %cst_25 {dimension_numbers = #tpu.dot_dimension_numbers<[1], [0], [0], [1], [0, 0, 1, 1], [], []>} : vector<4x32xbf16>, vector<32x128xbf16>, vector<4x128xf32> -> vector<4x128xf32>
    %133 = arith.addf %130, %132 : vector<4x128xf32>
    %134 = vector.extract_strided_slice %133 {offsets = [0, 0], sizes = [4, 96], strides = [1, 1]} : vector<4x128xf32> to vector<4x96xf32>
    %135 = arith.negf %134 : vector<4x96xf32>
    %136 = math.exp %135 : vector<4x96xf32>
    %cst_26 = arith.constant 1.000000e+00 : f32
    %137 = vector.broadcast %cst_26 : f32 to vector<4x96xf32>
    %138 = arith.addf %137, %136 : vector<4x96xf32>
    %139 = arith.divf %137, %138 : vector<4x96xf32>
    %140 = vector.extract_strided_slice %139 {offsets = [0, 0], sizes = [4, 32], strides = [1, 1]} : vector<4x96xf32> to vector<4x32xf32>
    %141 = vector.extract_strided_slice %139 {offsets = [0, 32], sizes = [4, 32], strides = [1, 1]} : vector<4x96xf32> to vector<4x32xf32>
    %142 = vector.extract_strided_slice %139 {offsets = [0, 64], sizes = [4, 32], strides = [1, 1]} : vector<4x96xf32> to vector<4x32xf32>
    %143 = vector.extract_strided_slice %133 {offsets = [0, 96], sizes = [4, 32], strides = [1, 1]} : vector<4x128xf32> to vector<4x32xf32>
    %144 = math.tanh %143 : vector<4x32xf32>
    %145 = arith.mulf %141, %127 : vector<4x32xf32>
    %146 = arith.mulf %140, %144 : vector<4x32xf32>
    %147 = arith.addf %145, %146 : vector<4x32xf32>
    %148 = math.tanh %147 : vector<4x32xf32>
    %149 = arith.mulf %142, %148 : vector<4x32xf32>
    %150 = vector.extract_strided_slice %27 {offsets = [24, 0], sizes = [4, 128], strides = [1, 1]} : vector<32x128xf32> to vector<4x128xf32>
    %151 = arith.truncf %149 : vector<4x32xf32> to vector<4x32xbf16>
    %cst_27 = arith.constant dense<0.000000e+00> : vector<4x128xf32>
    %152 = tpu.matmul %151, %8, %cst_27 {dimension_numbers = #tpu.dot_dimension_numbers<[1], [0], [0], [1], [0, 0, 1, 1], [], []>} : vector<4x32xbf16>, vector<32x128xbf16>, vector<4x128xf32> -> vector<4x128xf32>
    %153 = arith.addf %150, %152 : vector<4x128xf32>
    %154 = vector.extract_strided_slice %153 {offsets = [0, 0], sizes = [4, 96], strides = [1, 1]} : vector<4x128xf32> to vector<4x96xf32>
    %155 = arith.negf %154 : vector<4x96xf32>
    %156 = math.exp %155 : vector<4x96xf32>
    %cst_28 = arith.constant 1.000000e+00 : f32
    %157 = vector.broadcast %cst_28 : f32 to vector<4x96xf32>
    %158 = arith.addf %157, %156 : vector<4x96xf32>
    %159 = arith.divf %157, %158 : vector<4x96xf32>
    %160 = vector.extract_strided_slice %159 {offsets = [0, 0], sizes = [4, 32], strides = [1, 1]} : vector<4x96xf32> to vector<4x32xf32>
    %161 = vector.extract_strided_slice %159 {offsets = [0, 32], sizes = [4, 32], strides = [1, 1]} : vector<4x96xf32> to vector<4x32xf32>
    %162 = vector.extract_strided_slice %159 {offsets = [0, 64], sizes = [4, 32], strides = [1, 1]} : vector<4x96xf32> to vector<4x32xf32>
    %163 = vector.extract_strided_slice %153 {offsets = [0, 96], sizes = [4, 32], strides = [1, 1]} : vector<4x128xf32> to vector<4x32xf32>
    %164 = math.tanh %163 : vector<4x32xf32>
    %165 = arith.mulf %161, %147 : vector<4x32xf32>
    %166 = arith.mulf %160, %164 : vector<4x32xf32>
    %167 = arith.addf %165, %166 : vector<4x32xf32>
    %168 = math.tanh %167 : vector<4x32xf32>
    %169 = arith.mulf %162, %168 : vector<4x32xf32>
    %170 = vector.extract_strided_slice %27 {offsets = [28, 0], sizes = [4, 128], strides = [1, 1]} : vector<32x128xf32> to vector<4x128xf32>
    %171 = arith.truncf %169 : vector<4x32xf32> to vector<4x32xbf16>
    %cst_29 = arith.constant dense<0.000000e+00> : vector<4x128xf32>
    %172 = tpu.matmul %171, %8, %cst_29 {dimension_numbers = #tpu.dot_dimension_numbers<[1], [0], [0], [1], [0, 0, 1, 1], [], []>} : vector<4x32xbf16>, vector<32x128xbf16>, vector<4x128xf32> -> vector<4x128xf32>
    %173 = arith.addf %170, %172 : vector<4x128xf32>
    %174 = vector.extract_strided_slice %173 {offsets = [0, 0], sizes = [4, 96], strides = [1, 1]} : vector<4x128xf32> to vector<4x96xf32>
    %175 = arith.negf %174 : vector<4x96xf32>
    %176 = math.exp %175 : vector<4x96xf32>
    %cst_30 = arith.constant 1.000000e+00 : f32
    %177 = vector.broadcast %cst_30 : f32 to vector<4x96xf32>
    %178 = arith.addf %177, %176 : vector<4x96xf32>
    %179 = arith.divf %177, %178 : vector<4x96xf32>
    %180 = vector.extract_strided_slice %179 {offsets = [0, 0], sizes = [4, 32], strides = [1, 1]} : vector<4x96xf32> to vector<4x32xf32>
    %181 = vector.extract_strided_slice %179 {offsets = [0, 32], sizes = [4, 32], strides = [1, 1]} : vector<4x96xf32> to vector<4x32xf32>
    %182 = vector.extract_strided_slice %179 {offsets = [0, 64], sizes = [4, 32], strides = [1, 1]} : vector<4x96xf32> to vector<4x32xf32>
    %183 = vector.extract_strided_slice %173 {offsets = [0, 96], sizes = [4, 32], strides = [1, 1]} : vector<4x128xf32> to vector<4x32xf32>
    %184 = math.tanh %183 : vector<4x32xf32>
    %185 = arith.mulf %181, %167 : vector<4x32xf32>
    %186 = arith.mulf %180, %184 : vector<4x32xf32>
    %187 = arith.addf %185, %186 : vector<4x32xf32>
    %188 = math.tanh %187 : vector<4x32xf32>
    %189 = arith.mulf %182, %188 : vector<4x32xf32>
    %cst_31 = arith.constant dense<0.000000e+00> : vector<4xf32>
    %190 = vector.multi_reduction <add>, %189, %cst_31 [1] : vector<4x32xf32> to vector<4xf32>
    %191 = vector.shape_cast %190 : vector<4xf32> to vector<4x1xf32>
    %cst_32 = arith.constant 3.200000e+01 : f32
    %192 = vector.broadcast %cst_32 : f32 to vector<4x1xf32>
    %193 = arith.divf %191, %192 : vector<4x1xf32>
    %194 = vector.broadcast %193 : vector<4x1xf32> to vector<4x32xf32>
    %195 = arith.subf %189, %194 : vector<4x32xf32>
    %196 = arith.mulf %195, %195 : vector<4x32xf32>
    %cst_33 = arith.constant dense<0.000000e+00> : vector<4xf32>
    %197 = vector.multi_reduction <add>, %196, %cst_33 [1] : vector<4x32xf32> to vector<4xf32>
    %198 = vector.shape_cast %197 : vector<4xf32> to vector<4x1xf32>
    %cst_34 = arith.constant 3.200000e+01 : f32
    %199 = vector.broadcast %cst_34 : f32 to vector<4x1xf32>
    %200 = arith.divf %198, %199 : vector<4x1xf32>
    %201 = vector.broadcast %193 : vector<4x1xf32> to vector<4x32xf32>
    %202 = arith.subf %189, %201 : vector<4x32xf32>
    %cst_35 = arith.constant 9.99999974E-6 : f32
    %203 = vector.broadcast %cst_35 : f32 to vector<4x1xf32>
    %204 = arith.addf %200, %203 : vector<4x1xf32>
    %205 = math.rsqrt %204 : vector<4x1xf32>
    %206 = vector.broadcast %205 : vector<4x1xf32> to vector<4x32xf32>
    %207 = arith.mulf %202, %206 : vector<4x32xf32>
    %208 = vector.broadcast %14 : vector<1x32xf32> to vector<4x32xf32>
    %209 = arith.mulf %207, %208 : vector<4x32xf32>
    %210 = vector.broadcast %15 : vector<1x32xf32> to vector<4x32xf32>
    %211 = arith.addf %209, %210 : vector<4x32xf32>
    %212 = arith.truncf %211 : vector<4x32xf32> to vector<4x32xbf16>
    %cst_36 = arith.constant dense<0.000000e+00> : vector<4x32xf32>
    %213 = tpu.matmul %212, %9, %cst_36 {dimension_numbers = #tpu.dot_dimension_numbers<[1], [0], [0], [1], [0, 0, 1, 1], [], []>} : vector<4x32xbf16>, vector<32x32xbf16>, vector<4x32xf32> -> vector<4x32xf32>
    %214 = vector.broadcast %16 : vector<1x32xf32> to vector<4x32xf32>
    %215 = arith.addf %213, %214 : vector<4x32xf32>
    %216 = math.tanh %215 : vector<4x32xf32>
    %217 = vector.broadcast %17 : vector<1x32xf32> to vector<4x32xf32>
    %218 = arith.mulf %216, %217 : vector<4x32xf32>
    %cst_37 = arith.constant dense<0.000000e+00> : vector<4xf32>
    %219 = vector.multi_reduction <add>, %218, %cst_37 [1] : vector<4x32xf32> to vector<4xf32>
    %220 = vector.shape_cast %219 : vector<4xf32> to vector<4x1xf32>
    %221 = vector.broadcast %18 : vector<1x1xf32> to vector<4x1xf32>
    %222 = arith.addf %220, %221 : vector<4x1xf32>
    %223 = math.tanh %222 : vector<4x1xf32>
    %224 = tpu.concatenate %189, %187 in 1 : vector<4x32xf32>, vector<4x32xf32> -> vector<4x64xf32>
    %c0_38 = arith.constant 0 : index
    %c0_39 = arith.constant 0 : index
    %c0_40 = arith.constant 0 : index
    %225 = vector.load %arg7[%c0_38, %c0_39, %c0_40] : memref<2x4x64xf32, #tpu.memory_space<vmem>>, vector<1x4x64xf32>
    %226 = vector.shape_cast %225 : vector<1x4x64xf32> to vector<4x64xf32>
    %227 = vector.shape_cast %224 : vector<4x64xf32> to vector<1x4x64xf32>
    tpu.vector_store %arg7[%c0_38, %c0_39, %c0_40], %227 {strides = array<i32>} : memref<2x4x64xf32, #tpu.memory_space<vmem>>, vector<1x4x64xf32>,
    %c1 = arith.constant 1 : index
    %c0_41 = arith.constant 0 : index
    %c0_42 = arith.constant 0 : index
    %228 = vector.load %arg0[%c1, %c0_41, %c0_42] : memref<2x32x4xf32, #tpu.memory_space<vmem>>, vector<1x32x4xf32>
    %229 = vector.shape_cast %228 : vector<1x32x4xf32> to vector<32x4xf32>
    %230 = arith.truncf %229 : vector<32x4xf32> to vector<32x4xbf16>
    %c1_43 = arith.constant 1 : index
    %c0_44 = arith.constant 0 : index
    %c0_45 = arith.constant 0 : index
    %231 = vector.load %arg1[%c1_43, %c0_44, %c0_45] : memref<2x4x32xbf16, #tpu.memory_space<vmem>>, vector<1x4x32xbf16>
    %232 = vector.shape_cast %231 : vector<1x4x32xbf16> to vector<4x32xbf16>
    %c1_46 = arith.constant 1 : index
    %c0_47 = arith.constant 0 : index
    %c0_48 = arith.constant 0 : index
    %233 = vector.load %arg2[%c1_46, %c0_47, %c0_48] : memref<2x32x288xbf16, #tpu.memory_space<vmem>>, vector<1x32x288xbf16>
    %234 = vector.shape_cast %233 : vector<1x32x288xbf16> to vector<32x288xbf16>
    %235 = vector.extract_strided_slice %234 {offsets = [0, 0], sizes = [32, 128], strides = [1, 1]} : vector<32x288xbf16> to vector<32x128xbf16>
    %236 = vector.extract_strided_slice %234 {offsets = [0, 128], sizes = [32, 128], strides = [1, 1]} : vector<32x288xbf16> to vector<32x128xbf16>
    %237 = vector.extract_strided_slice %234 {offsets = [0, 256], sizes = [32, 32], strides = [1, 1]} : vector<32x288xbf16> to vector<32x32xbf16>
    %c1_49 = arith.constant 1 : index
    %c0_50 = arith.constant 0 : index
    %c0_51 = arith.constant 0 : index
    %238 = vector.load %arg3[%c1_49, %c0_50, %c0_51] : memref<2x8x128xf32, #tpu.memory_space<vmem>>, vector<1x8x128xf32>
    %239 = vector.shape_cast %238 : vector<1x8x128xf32> to vector<8x128xf32>
    %240 = vector.extract_strided_slice %239 {offsets = [0, 0], sizes = [1, 32], strides = [1, 1]} : vector<8x128xf32> to vector<1x32xf32>
    %241 = vector.extract_strided_slice %239 {offsets = [1, 0], sizes = [1, 128], strides = [1, 1]} : vector<8x128xf32> to vector<1x128xf32>
    %242 = vector.extract_strided_slice %239 {offsets = [2, 0], sizes = [1, 32], strides = [1, 1]} : vector<8x128xf32> to vector<1x32xf32>
    %243 = vector.extract_strided_slice %239 {offsets = [3, 0], sizes = [1, 32], strides = [1, 1]} : vector<8x128xf32> to vector<1x32xf32>
    %244 = vector.extract_strided_slice %239 {offsets = [4, 0], sizes = [1, 32], strides = [1, 1]} : vector<8x128xf32> to vector<1x32xf32>
    %245 = vector.extract_strided_slice %239 {offsets = [5, 0], sizes = [1, 32], strides = [1, 1]} : vector<8x128xf32> to vector<1x32xf32>
    %246 = vector.extract_strided_slice %239 {offsets = [6, 0], sizes = [1, 1], strides = [1, 1]} : vector<8x128xf32> to vector<1x1xf32>
    %cst_52 = arith.constant dense<0.000000e+00> : vector<32x32xf32>
    %247 = tpu.matmul %230, %232, %cst_52 {dimension_numbers = #tpu.dot_dimension_numbers<[1], [0], [0], [1], [0, 0, 1, 1], [], []>} : vector<32x4xbf16>, vector<4x32xbf16>, vector<32x32xf32> -> vector<32x32xf32>
    %248 = vector.broadcast %240 : vector<1x32xf32> to vector<32x32xf32>
    %249 = arith.addf %247, %248 : vector<32x32xf32>
    %cst_53 = arith.constant 0.000000e+00 : f32
    %250 = vector.broadcast %cst_53 : f32 to vector<32x32xf32>
    %251 = arith.maximumf %249, %250 : vector<32x32xf32>
    %252 = arith.truncf %251 : vector<32x32xf32> to vector<32x32xbf16>
    %cst_54 = arith.constant dense<0.000000e+00> : vector<32x128xf32>
    %253 = tpu.matmul %252, %235, %cst_54 {dimension_numbers = #tpu.dot_dimension_numbers<[1], [0], [0], [1], [0, 0, 1, 1], [], []>} : vector<32x32xbf16>, vector<32x128xbf16>, vector<32x128xf32> -> vector<32x128xf32>
    %254 = vector.broadcast %241 : vector<1x128xf32> to vector<32x128xf32>
    %255 = arith.addf %253, %254 : vector<32x128xf32>
    %cst_55 = arith.constant 0.000000e+00 : f32
    %256 = vector.broadcast %cst_55 : f32 to vector<4x32xf32>
    %cst_56 = arith.constant 0.000000e+00 : f32
    %257 = vector.broadcast %cst_56 : f32 to vector<4x32xf32>
    %258 = vector.extract_strided_slice %255 {offsets = [0, 0], sizes = [4, 128], strides = [1, 1]} : vector<32x128xf32> to vector<4x128xf32>
    %259 = arith.truncf %256 : vector<4x32xf32> to vector<4x32xbf16>
    %cst_57 = arith.constant dense<0.000000e+00> : vector<4x128xf32>
    %260 = tpu.matmul %259, %236, %cst_57 {dimension_numbers = #tpu.dot_dimension_numbers<[1], [0], [0], [1], [0, 0, 1, 1], [], []>} : vector<4x32xbf16>, vector<32x128xbf16>, vector<4x128xf32> -> vector<4x128xf32>
    %261 = arith.addf %258, %260 : vector<4x128xf32>
    %262 = vector.extract_strided_slice %261 {offsets = [0, 0], sizes = [4, 96], strides = [1, 1]} : vector<4x128xf32> to vector<4x96xf32>
    %263 = arith.negf %262 : vector<4x96xf32>
    %264 = math.exp %263 : vector<4x96xf32>
    %cst_58 = arith.constant 1.000000e+00 : f32
    %265 = vector.broadcast %cst_58 : f32 to vector<4x96xf32>
    %266 = arith.addf %265, %264 : vector<4x96xf32>
    %267 = arith.divf %265, %266 : vector<4x96xf32>
    %268 = vector.extract_strided_slice %267 {offsets = [0, 0], sizes = [4, 32], strides = [1, 1]} : vector<4x96xf32> to vector<4x32xf32>
    %269 = vector.extract_strided_slice %267 {offsets = [0, 32], sizes = [4, 32], strides = [1, 1]} : vector<4x96xf32> to vector<4x32xf32>
    %270 = vector.extract_strided_slice %267 {offsets = [0, 64], sizes = [4, 32], strides = [1, 1]} : vector<4x96xf32> to vector<4x32xf32>
    %271 = vector.extract_strided_slice %261 {offsets = [0, 96], sizes = [4, 32], strides = [1, 1]} : vector<4x128xf32> to vector<4x32xf32>
    %272 = math.tanh %271 : vector<4x32xf32>
    %273 = arith.mulf %269, %257 : vector<4x32xf32>
    %274 = arith.mulf %268, %272 : vector<4x32xf32>
    %275 = arith.addf %273, %274 : vector<4x32xf32>
    %276 = math.tanh %275 : vector<4x32xf32>
    %277 = arith.mulf %270, %276 : vector<4x32xf32>
    %278 = vector.extract_strided_slice %255 {offsets = [4, 0], sizes = [4, 128], strides = [1, 1]} : vector<32x128xf32> to vector<4x128xf32>
    %279 = arith.truncf %277 : vector<4x32xf32> to vector<4x32xbf16>
    %cst_59 = arith.constant dense<0.000000e+00> : vector<4x128xf32>
    %280 = tpu.matmul %279, %236, %cst_59 {dimension_numbers = #tpu.dot_dimension_numbers<[1], [0], [0], [1], [0, 0, 1, 1], [], []>} : vector<4x32xbf16>, vector<32x128xbf16>, vector<4x128xf32> -> vector<4x128xf32>
    %281 = arith.addf %278, %280 : vector<4x128xf32>
    %282 = vector.extract_strided_slice %281 {offsets = [0, 0], sizes = [4, 96], strides = [1, 1]} : vector<4x128xf32> to vector<4x96xf32>
    %283 = arith.negf %282 : vector<4x96xf32>
    %284 = math.exp %283 : vector<4x96xf32>
    %cst_60 = arith.constant 1.000000e+00 : f32
    %285 = vector.broadcast %cst_60 : f32 to vector<4x96xf32>
    %286 = arith.addf %285, %284 : vector<4x96xf32>
    %287 = arith.divf %285, %286 : vector<4x96xf32>
    %288 = vector.extract_strided_slice %287 {offsets = [0, 0], sizes = [4, 32], strides = [1, 1]} : vector<4x96xf32> to vector<4x32xf32>
    %289 = vector.extract_strided_slice %287 {offsets = [0, 32], sizes = [4, 32], strides = [1, 1]} : vector<4x96xf32> to vector<4x32xf32>
    %290 = vector.extract_strided_slice %287 {offsets = [0, 64], sizes = [4, 32], strides = [1, 1]} : vector<4x96xf32> to vector<4x32xf32>
    %291 = vector.extract_strided_slice %281 {offsets = [0, 96], sizes = [4, 32], strides = [1, 1]} : vector<4x128xf32> to vector<4x32xf32>
    %292 = math.tanh %291 : vector<4x32xf32>
    %293 = arith.mulf %289, %275 : vector<4x32xf32>
    %294 = arith.mulf %288, %292 : vector<4x32xf32>
    %295 = arith.addf %293, %294 : vector<4x32xf32>
    %296 = math.tanh %295 : vector<4x32xf32>
    %297 = arith.mulf %290, %296 : vector<4x32xf32>
    %298 = vector.extract_strided_slice %255 {offsets = [8, 0], sizes = [4, 128], strides = [1, 1]} : vector<32x128xf32> to vector<4x128xf32>
    %299 = arith.truncf %297 : vector<4x32xf32> to vector<4x32xbf16>
    %cst_61 = arith.constant dense<0.000000e+00> : vector<4x128xf32>
    %300 = tpu.matmul %299, %236, %cst_61 {dimension_numbers = #tpu.dot_dimension_numbers<[1], [0], [0], [1], [0, 0, 1, 1], [], []>} : vector<4x32xbf16>, vector<32x128xbf16>, vector<4x128xf32> -> vector<4x128xf32>
    %301 = arith.addf %298, %300 : vector<4x128xf32>
    %302 = vector.extract_strided_slice %301 {offsets = [0, 0], sizes = [4, 96], strides = [1, 1]} : vector<4x128xf32> to vector<4x96xf32>
    %303 = arith.negf %302 : vector<4x96xf32>
    %304 = math.exp %303 : vector<4x96xf32>
    %cst_62 = arith.constant 1.000000e+00 : f32
    %305 = vector.broadcast %cst_62 : f32 to vector<4x96xf32>
    %306 = arith.addf %305, %304 : vector<4x96xf32>
    %307 = arith.divf %305, %306 : vector<4x96xf32>
    %308 = vector.extract_strided_slice %307 {offsets = [0, 0], sizes = [4, 32], strides = [1, 1]} : vector<4x96xf32> to vector<4x32xf32>
    %309 = vector.extract_strided_slice %307 {offsets = [0, 32], sizes = [4, 32], strides = [1, 1]} : vector<4x96xf32> to vector<4x32xf32>
    %310 = vector.extract_strided_slice %307 {offsets = [0, 64], sizes = [4, 32], strides = [1, 1]} : vector<4x96xf32> to vector<4x32xf32>
    %311 = vector.extract_strided_slice %301 {offsets = [0, 96], sizes = [4, 32], strides = [1, 1]} : vector<4x128xf32> to vector<4x32xf32>
    %312 = math.tanh %311 : vector<4x32xf32>
    %313 = arith.mulf %309, %295 : vector<4x32xf32>
    %314 = arith.mulf %308, %312 : vector<4x32xf32>
    %315 = arith.addf %313, %314 : vector<4x32xf32>
    %316 = math.tanh %315 : vector<4x32xf32>
    %317 = arith.mulf %310, %316 : vector<4x32xf32>
    %318 = vector.extract_strided_slice %255 {offsets = [12, 0], sizes = [4, 128], strides = [1, 1]} : vector<32x128xf32> to vector<4x128xf32>
    %319 = arith.truncf %317 : vector<4x32xf32> to vector<4x32xbf16>
    %cst_63 = arith.constant dense<0.000000e+00> : vector<4x128xf32>
    %320 = tpu.matmul %319, %236, %cst_63 {dimension_numbers = #tpu.dot_dimension_numbers<[1], [0], [0], [1], [0, 0, 1, 1], [], []>} : vector<4x32xbf16>, vector<32x128xbf16>, vector<4x128xf32> -> vector<4x128xf32>
    %321 = arith.addf %318, %320 : vector<4x128xf32>
    %322 = vector.extract_strided_slice %321 {offsets = [0, 0], sizes = [4, 96], strides = [1, 1]} : vector<4x128xf32> to vector<4x96xf32>
    %323 = arith.negf %322 : vector<4x96xf32>
    %324 = math.exp %323 : vector<4x96xf32>
    %cst_64 = arith.constant 1.000000e+00 : f32
    %325 = vector.broadcast %cst_64 : f32 to vector<4x96xf32>
    %326 = arith.addf %325, %324 : vector<4x96xf32>
    %327 = arith.divf %325, %326 : vector<4x96xf32>
    %328 = vector.extract_strided_slice %327 {offsets = [0, 0], sizes = [4, 32], strides = [1, 1]} : vector<4x96xf32> to vector<4x32xf32>
    %329 = vector.extract_strided_slice %327 {offsets = [0, 32], sizes = [4, 32], strides = [1, 1]} : vector<4x96xf32> to vector<4x32xf32>
    %330 = vector.extract_strided_slice %327 {offsets = [0, 64], sizes = [4, 32], strides = [1, 1]} : vector<4x96xf32> to vector<4x32xf32>
    %331 = vector.extract_strided_slice %321 {offsets = [0, 96], sizes = [4, 32], strides = [1, 1]} : vector<4x128xf32> to vector<4x32xf32>
    %332 = math.tanh %331 : vector<4x32xf32>
    %333 = arith.mulf %329, %315 : vector<4x32xf32>
    %334 = arith.mulf %328, %332 : vector<4x32xf32>
    %335 = arith.addf %333, %334 : vector<4x32xf32>
    %336 = math.tanh %335 : vector<4x32xf32>
    %337 = arith.mulf %330, %336 : vector<4x32xf32>
    %338 = vector.extract_strided_slice %255 {offsets = [16, 0], sizes = [4, 128], strides = [1, 1]} : vector<32x128xf32> to vector<4x128xf32>
    %339 = arith.truncf %337 : vector<4x32xf32> to vector<4x32xbf16>
    %cst_65 = arith.constant dense<0.000000e+00> : vector<4x128xf32>
    %340 = tpu.matmul %339, %236, %cst_65 {dimension_numbers = #tpu.dot_dimension_numbers<[1], [0], [0], [1], [0, 0, 1, 1], [], []>} : vector<4x32xbf16>, vector<32x128xbf16>, vector<4x128xf32> -> vector<4x128xf32>
    %341 = arith.addf %338, %340 : vector<4x128xf32>
    %342 = vector.extract_strided_slice %341 {offsets = [0, 0], sizes = [4, 96], strides = [1, 1]} : vector<4x128xf32> to vector<4x96xf32>
    %343 = arith.negf %342 : vector<4x96xf32>
    %344 = math.exp %343 : vector<4x96xf32>
    %cst_66 = arith.constant 1.000000e+00 : f32
    %345 = vector.broadcast %cst_66 : f32 to vector<4x96xf32>
    %346 = arith.addf %345, %344 : vector<4x96xf32>
    %347 = arith.divf %345, %346 : vector<4x96xf32>
    %348 = vector.extract_strided_slice %347 {offsets = [0, 0], sizes = [4, 32], strides = [1, 1]} : vector<4x96xf32> to vector<4x32xf32>
    %349 = vector.extract_strided_slice %347 {offsets = [0, 32], sizes = [4, 32], strides = [1, 1]} : vector<4x96xf32> to vector<4x32xf32>
    %350 = vector.extract_strided_slice %347 {offsets = [0, 64], sizes = [4, 32], strides = [1, 1]} : vector<4x96xf32> to vector<4x32xf32>
    %351 = vector.extract_strided_slice %341 {offsets = [0, 96], sizes = [4, 32], strides = [1, 1]} : vector<4x128xf32> to vector<4x32xf32>
    %352 = math.tanh %351 : vector<4x32xf32>
    %353 = arith.mulf %349, %335 : vector<4x32xf32>
    %354 = arith.mulf %348, %352 : vector<4x32xf32>
    %355 = arith.addf %353, %354 : vector<4x32xf32>
    %356 = math.tanh %355 : vector<4x32xf32>
    %357 = arith.mulf %350, %356 : vector<4x32xf32>
    %358 = vector.extract_strided_slice %255 {offsets = [20, 0], sizes = [4, 128], strides = [1, 1]} : vector<32x128xf32> to vector<4x128xf32>
    %359 = arith.truncf %357 : vector<4x32xf32> to vector<4x32xbf16>
    %cst_67 = arith.constant dense<0.000000e+00> : vector<4x128xf32>
    %360 = tpu.matmul %359, %236, %cst_67 {dimension_numbers = #tpu.dot_dimension_numbers<[1], [0], [0], [1], [0, 0, 1, 1], [], []>} : vector<4x32xbf16>, vector<32x128xbf16>, vector<4x128xf32> -> vector<4x128xf32>
    %361 = arith.addf %358, %360 : vector<4x128xf32>
    %362 = vector.extract_strided_slice %361 {offsets = [0, 0], sizes = [4, 96], strides = [1, 1]} : vector<4x128xf32> to vector<4x96xf32>
    %363 = arith.negf %362 : vector<4x96xf32>
    %364 = math.exp %363 : vector<4x96xf32>
    %cst_68 = arith.constant 1.000000e+00 : f32
    %365 = vector.broadcast %cst_68 : f32 to vector<4x96xf32>
    %366 = arith.addf %365, %364 : vector<4x96xf32>
    %367 = arith.divf %365, %366 : vector<4x96xf32>
    %368 = vector.extract_strided_slice %367 {offsets = [0, 0], sizes = [4, 32], strides = [1, 1]} : vector<4x96xf32> to vector<4x32xf32>
    %369 = vector.extract_strided_slice %367 {offsets = [0, 32], sizes = [4, 32], strides = [1, 1]} : vector<4x96xf32> to vector<4x32xf32>
    %370 = vector.extract_strided_slice %367 {offsets = [0, 64], sizes = [4, 32], strides = [1, 1]} : vector<4x96xf32> to vector<4x32xf32>
    %371 = vector.extract_strided_slice %361 {offsets = [0, 96], sizes = [4, 32], strides = [1, 1]} : vector<4x128xf32> to vector<4x32xf32>
    %372 = math.tanh %371 : vector<4x32xf32>
    %373 = arith.mulf %369, %355 : vector<4x32xf32>
    %374 = arith.mulf %368, %372 : vector<4x32xf32>
    %375 = arith.addf %373, %374 : vector<4x32xf32>
    %376 = math.tanh %375 : vector<4x32xf32>
    %377 = arith.mulf %370, %376 : vector<4x32xf32>
    %378 = vector.extract_strided_slice %255 {offsets = [24, 0], sizes = [4, 128], strides = [1, 1]} : vector<32x128xf32> to vector<4x128xf32>
    %379 = arith.truncf %377 : vector<4x32xf32> to vector<4x32xbf16>
    %cst_69 = arith.constant dense<0.000000e+00> : vector<4x128xf32>
    %380 = tpu.matmul %379, %236, %cst_69 {dimension_numbers = #tpu.dot_dimension_numbers<[1], [0], [0], [1], [0, 0, 1, 1], [], []>} : vector<4x32xbf16>, vector<32x128xbf16>, vector<4x128xf32> -> vector<4x128xf32>
    %381 = arith.addf %378, %380 : vector<4x128xf32>
    %382 = vector.extract_strided_slice %381 {offsets = [0, 0], sizes = [4, 96], strides = [1, 1]} : vector<4x128xf32> to vector<4x96xf32>
    %383 = arith.negf %382 : vector<4x96xf32>
    %384 = math.exp %383 : vector<4x96xf32>
    %cst_70 = arith.constant 1.000000e+00 : f32
    %385 = vector.broadcast %cst_70 : f32 to vector<4x96xf32>
    %386 = arith.addf %385, %384 : vector<4x96xf32>
    %387 = arith.divf %385, %386 : vector<4x96xf32>
    %388 = vector.extract_strided_slice %387 {offsets = [0, 0], sizes = [4, 32], strides = [1, 1]} : vector<4x96xf32> to vector<4x32xf32>
    %389 = vector.extract_strided_slice %387 {offsets = [0, 32], sizes = [4, 32], strides = [1, 1]} : vector<4x96xf32> to vector<4x32xf32>
    %390 = vector.extract_strided_slice %387 {offsets = [0, 64], sizes = [4, 32], strides = [1, 1]} : vector<4x96xf32> to vector<4x32xf32>
    %391 = vector.extract_strided_slice %381 {offsets = [0, 96], sizes = [4, 32], strides = [1, 1]} : vector<4x128xf32> to vector<4x32xf32>
    %392 = math.tanh %391 : vector<4x32xf32>
    %393 = arith.mulf %389, %375 : vector<4x32xf32>
    %394 = arith.mulf %388, %392 : vector<4x32xf32>
    %395 = arith.addf %393, %394 : vector<4x32xf32>
    %396 = math.tanh %395 : vector<4x32xf32>
    %397 = arith.mulf %390, %396 : vector<4x32xf32>
    %398 = vector.extract_strided_slice %255 {offsets = [28, 0], sizes = [4, 128], strides = [1, 1]} : vector<32x128xf32> to vector<4x128xf32>
    %399 = arith.truncf %397 : vector<4x32xf32> to vector<4x32xbf16>
    %cst_71 = arith.constant dense<0.000000e+00> : vector<4x128xf32>
    %400 = tpu.matmul %399, %236, %cst_71 {dimension_numbers = #tpu.dot_dimension_numbers<[1], [0], [0], [1], [0, 0, 1, 1], [], []>} : vector<4x32xbf16>, vector<32x128xbf16>, vector<4x128xf32> -> vector<4x128xf32>
    %401 = arith.addf %398, %400 : vector<4x128xf32>
    %402 = vector.extract_strided_slice %401 {offsets = [0, 0], sizes = [4, 96], strides = [1, 1]} : vector<4x128xf32> to vector<4x96xf32>
    %403 = arith.negf %402 : vector<4x96xf32>
    %404 = math.exp %403 : vector<4x96xf32>
    %cst_72 = arith.constant 1.000000e+00 : f32
    %405 = vector.broadcast %cst_72 : f32 to vector<4x96xf32>
    %406 = arith.addf %405, %404 : vector<4x96xf32>
    %407 = arith.divf %405, %406 : vector<4x96xf32>
    %408 = vector.extract_strided_slice %407 {offsets = [0, 0], sizes = [4, 32], strides = [1, 1]} : vector<4x96xf32> to vector<4x32xf32>
    %409 = vector.extract_strided_slice %407 {offsets = [0, 32], sizes = [4, 32], strides = [1, 1]} : vector<4x96xf32> to vector<4x32xf32>
    %410 = vector.extract_strided_slice %407 {offsets = [0, 64], sizes = [4, 32], strides = [1, 1]} : vector<4x96xf32> to vector<4x32xf32>
    %411 = vector.extract_strided_slice %401 {offsets = [0, 96], sizes = [4, 32], strides = [1, 1]} : vector<4x128xf32> to vector<4x32xf32>
    %412 = math.tanh %411 : vector<4x32xf32>
    %413 = arith.mulf %409, %395 : vector<4x32xf32>
    %414 = arith.mulf %408, %412 : vector<4x32xf32>
    %415 = arith.addf %413, %414 : vector<4x32xf32>
    %416 = math.tanh %415 : vector<4x32xf32>
    %417 = arith.mulf %410, %416 : vector<4x32xf32>
    %cst_73 = arith.constant dense<0.000000e+00> : vector<4xf32>
    %418 = vector.multi_reduction <add>, %417, %cst_73 [1] : vector<4x32xf32> to vector<4xf32>
    %419 = vector.shape_cast %418 : vector<4xf32> to vector<4x1xf32>
    %cst_74 = arith.constant 3.200000e+01 : f32
    %420 = vector.broadcast %cst_74 : f32 to vector<4x1xf32>
    %421 = arith.divf %419, %420 : vector<4x1xf32>
    %422 = vector.broadcast %421 : vector<4x1xf32> to vector<4x32xf32>
    %423 = arith.subf %417, %422 : vector<4x32xf32>
    %424 = arith.mulf %423, %423 : vector<4x32xf32>
    %cst_75 = arith.constant dense<0.000000e+00> : vector<4xf32>
    %425 = vector.multi_reduction <add>, %424, %cst_75 [1] : vector<4x32xf32> to vector<4xf32>
    %426 = vector.shape_cast %425 : vector<4xf32> to vector<4x1xf32>
    %cst_76 = arith.constant 3.200000e+01 : f32
    %427 = vector.broadcast %cst_76 : f32 to vector<4x1xf32>
    %428 = arith.divf %426, %427 : vector<4x1xf32>
    %429 = vector.broadcast %421 : vector<4x1xf32> to vector<4x32xf32>
    %430 = arith.subf %417, %429 : vector<4x32xf32>
    %cst_77 = arith.constant 9.99999974E-6 : f32
    %431 = vector.broadcast %cst_77 : f32 to vector<4x1xf32>
    %432 = arith.addf %428, %431 : vector<4x1xf32>
    %433 = math.rsqrt %432 : vector<4x1xf32>
    %434 = vector.broadcast %433 : vector<4x1xf32> to vector<4x32xf32>
    %435 = arith.mulf %430, %434 : vector<4x32xf32>
    %436 = vector.broadcast %242 : vector<1x32xf32> to vector<4x32xf32>
    %437 = arith.mulf %435, %436 : vector<4x32xf32>
    %438 = vector.broadcast %243 : vector<1x32xf32> to vector<4x32xf32>
    %439 = arith.addf %437, %438 : vector<4x32xf32>
    %440 = arith.truncf %439 : vector<4x32xf32> to vector<4x32xbf16>
    %cst_78 = arith.constant dense<0.000000e+00> : vector<4x32xf32>
    %441 = tpu.matmul %440, %237, %cst_78 {dimension_numbers = #tpu.dot_dimension_numbers<[1], [0], [0], [1], [0, 0, 1, 1], [], []>} : vector<4x32xbf16>, vector<32x32xbf16>, vector<4x32xf32> -> vector<4x32xf32>
    %442 = vector.broadcast %244 : vector<1x32xf32> to vector<4x32xf32>
    %443 = arith.addf %441, %442 : vector<4x32xf32>
    %444 = math.tanh %443 : vector<4x32xf32>
    %445 = vector.broadcast %245 : vector<1x32xf32> to vector<4x32xf32>
    %446 = arith.mulf %444, %445 : vector<4x32xf32>
    %cst_79 = arith.constant dense<0.000000e+00> : vector<4xf32>
    %447 = vector.multi_reduction <add>, %446, %cst_79 [1] : vector<4x32xf32> to vector<4xf32>
    %448 = vector.shape_cast %447 : vector<4xf32> to vector<4x1xf32>
    %449 = vector.broadcast %246 : vector<1x1xf32> to vector<4x1xf32>
    %450 = arith.addf %448, %449 : vector<4x1xf32>
    %451 = math.tanh %450 : vector<4x1xf32>
    %452 = tpu.concatenate %417, %415 in 1 : vector<4x32xf32>, vector<4x32xf32> -> vector<4x64xf32>
    %c1_80 = arith.constant 1 : index
    %c0_81 = arith.constant 0 : index
    %c0_82 = arith.constant 0 : index
    %453 = vector.load %arg7[%c1_80, %c0_81, %c0_82] : memref<2x4x64xf32, #tpu.memory_space<vmem>>, vector<1x4x64xf32>
    %454 = vector.shape_cast %453 : vector<1x4x64xf32> to vector<4x64xf32>
    %455 = vector.shape_cast %452 : vector<4x64xf32> to vector<1x4x64xf32>
    tpu.vector_store %arg7[%c1_80, %c0_81, %c0_82], %455 {strides = array<i32>} : memref<2x4x64xf32, #tpu.memory_space<vmem>>, vector<1x4x64xf32>,
    %456 = tpu.concatenate %223, %451 in 1 : vector<4x1xf32>, vector<4x1xf32> -> vector<4x2xf32>
    %c0_83 = arith.constant 0 : index
    %c0_84 = arith.constant 0 : index
    %c0_85 = arith.constant 0 : index
    %457 = vector.load %arg4[%c0_83, %c0_84, %c0_85] : memref<4x4x2xf32, #tpu.memory_space<vmem>>, vector<1x4x2xf32>
    %458 = vector.shape_cast %457 : vector<1x4x2xf32> to vector<4x2xf32>
    %c1_86 = arith.constant 1 : index
    %c0_87 = arith.constant 0 : index
    %c0_88 = arith.constant 0 : index
    %459 = vector.load %arg4[%c1_86, %c0_87, %c0_88] : memref<4x4x2xf32, #tpu.memory_space<vmem>>, vector<1x4x2xf32>
    %460 = vector.shape_cast %459 : vector<1x4x2xf32> to vector<4x2xf32>
    %c2 = arith.constant 2 : index
    %c0_89 = arith.constant 0 : index
    %c0_90 = arith.constant 0 : index
    %461 = vector.load %arg4[%c2, %c0_89, %c0_90] : memref<4x4x2xf32, #tpu.memory_space<vmem>>, vector<1x4x2xf32>
    %462 = vector.shape_cast %461 : vector<1x4x2xf32> to vector<4x2xf32>
    %c3 = arith.constant 3 : index
    %c0_91 = arith.constant 0 : index
    %c0_92 = arith.constant 0 : index
    %463 = vector.load %arg4[%c3, %c0_91, %c0_92] : memref<4x4x2xf32, #tpu.memory_space<vmem>>, vector<1x4x2xf32>
    %464 = vector.shape_cast %463 : vector<1x4x2xf32> to vector<4x2xf32>
    %465 = vector.extract_strided_slice %464 {offsets = [0, 0], sizes = [4, 1], strides = [1, 1]} : vector<4x2xf32> to vector<4x1xf32>
    %466 = vector.extract_strided_slice %464 {offsets = [0, 1], sizes = [4, 1], strides = [1, 1]} : vector<4x2xf32> to vector<4x1xf32>
    %c0_93 = arith.constant 0 : index
    %c0_94 = arith.constant 0 : index
    %467 = vector.load %arg5[%c0_93, %c0_94] : memref<8x2xf32, #tpu.memory_space<vmem>>, vector<8x2xf32>
    %468 = vector.extract_strided_slice %467 {offsets = [0, 0], sizes = [1, 2], strides = [1, 1]} : vector<8x2xf32> to vector<1x2xf32>
    %469 = vector.extract_strided_slice %467 {offsets = [1, 0], sizes = [1, 2], strides = [1, 1]} : vector<8x2xf32> to vector<1x2xf32>
    %470 = vector.extract_strided_slice %467 {offsets = [2, 0], sizes = [1, 2], strides = [1, 1]} : vector<8x2xf32> to vector<1x2xf32>
    %471 = vector.extract_strided_slice %467 {offsets = [3, 0], sizes = [1, 2], strides = [1, 1]} : vector<8x2xf32> to vector<1x2xf32>
    %472 = vector.extract_strided_slice %467 {offsets = [4, 0], sizes = [1, 2], strides = [1, 1]} : vector<8x2xf32> to vector<1x2xf32>
    %cst_95 = arith.constant 1.000000e-01 : f32
    %473 = vector.broadcast %cst_95 : f32 to vector<4x2xf32>
    %474 = arith.mulf %456, %473 : vector<4x2xf32>
    %475 = arith.addf %474, %458 : vector<4x2xf32>
    %476 = arith.addf %458, %462 : vector<4x2xf32>
    %cst_96 = arith.constant 1.000000e-01 : f32
    %477 = vector.broadcast %cst_96 : f32 to vector<4x2xf32>
    %478 = arith.subf %476, %477 : vector<4x2xf32>
    %cst_97 = arith.constant 8.000000e-01 : f32
    %479 = vector.broadcast %cst_97 : f32 to vector<4x2xf32>
    %480 = arith.divf %478, %479 : vector<4x2xf32>
    %481 = vector.broadcast %471 : vector<1x2xf32> to vector<4x2xf32>
    %482 = arith.mulf %480, %481 : vector<4x2xf32>
    %483 = vector.broadcast %472 : vector<1x2xf32> to vector<4x2xf32>
    %484 = arith.addf %482, %483 : vector<4x2xf32>
    %485 = vector.broadcast %465 : vector<4x1xf32> to vector<4x2xf32>
    %486 = arith.subf %484, %485 : vector<4x2xf32>
    %487 = vector.broadcast %470 : vector<1x2xf32> to vector<4x2xf32>
    %488 = arith.mulf %487, %486 : vector<4x2xf32>
    %489 = arith.subf %462, %488 : vector<4x2xf32>
    %490 = vector.extract_strided_slice %484 {offsets = [0, 0], sizes = [4, 1], strides = [1, 1]} : vector<4x2xf32> to vector<4x1xf32>
    %491 = vector.extract_strided_slice %467 {offsets = [5, 0], sizes = [1, 2], strides = [1, 1]} : vector<8x2xf32> to vector<1x2xf32>
    %492 = vector.broadcast %490 : vector<4x1xf32> to vector<4x2xf32>
    %493 = vector.broadcast %491 : vector<1x2xf32> to vector<4x2xf32>
    %494 = arith.mulf %492, %493 : vector<4x2xf32>
    %495 = arith.addf %489, %494 : vector<4x2xf32>
    %496 = vector.extract_strided_slice %484 {offsets = [0, 1], sizes = [4, 1], strides = [1, 1]} : vector<4x2xf32> to vector<4x1xf32>
    %497 = vector.extract_strided_slice %467 {offsets = [6, 0], sizes = [1, 2], strides = [1, 1]} : vector<8x2xf32> to vector<1x2xf32>
    %498 = vector.broadcast %496 : vector<4x1xf32> to vector<4x2xf32>
    %499 = vector.broadcast %497 : vector<1x2xf32> to vector<4x2xf32>
    %500 = arith.mulf %498, %499 : vector<4x2xf32>
    %501 = arith.addf %495, %500 : vector<4x2xf32>
    %cst_98 = arith.constant 1.000000e-03 : f32
    %502 = vector.broadcast %cst_98 : f32 to vector<4x2xf32>
    %503 = arith.cmpf ogt, %460, %502 : vector<4x2xf32>
    %cst_99 = arith.constant 0.000000e+00 : f32
    %504 = vector.broadcast %cst_99 : f32 to vector<4x2xf32>
    %505 = arith.select %503, %460, %504 : vector<4x2xi1>, vector<4x2xf32>
    %cst_100 = arith.constant -1.000000e-03 : f32
    %506 = vector.broadcast %cst_100 : f32 to vector<4x2xf32>
    %507 = arith.cmpf olt, %460, %506 : vector<4x2xf32>
    %cst_101 = arith.constant 0.000000e+00 : f32
    %508 = vector.broadcast %cst_101 : f32 to vector<4x2xf32>
    %509 = arith.select %507, %460, %508 : vector<4x2xi1>, vector<4x2xf32>
    %cst_102 = arith.constant 1.000000e-03 : f32
    %510 = vector.broadcast %cst_102 : f32 to vector<4x2xf32>
    %511 = arith.cmpf ogt, %460, %510 : vector<4x2xf32>
    %cst_103 = arith.constant 1.000000e+00 : f32
    %cst_104 = arith.constant 0.000000e+00 : f32
    %512 = vector.broadcast %cst_103 : f32 to vector<4x2xf32>
    %513 = vector.broadcast %cst_104 : f32 to vector<4x2xf32>
    %514 = arith.select %511, %512, %513 : vector<4x2xi1>, vector<4x2xf32>
    %cst_105 = arith.constant dense<0xFF800000> : vector<4xf32>
    %515 = vector.multi_reduction <maximumf>, %514, %cst_105 [1] : vector<4x2xf32> to vector<4xf32>
    %516 = vector.shape_cast %515 : vector<4xf32> to vector<4x1xf32>
    %cst_106 = arith.constant -1.000000e-03 : f32
    %517 = vector.broadcast %cst_106 : f32 to vector<4x2xf32>
    %518 = arith.cmpf olt, %460, %517 : vector<4x2xf32>
    %cst_107 = arith.constant 1.000000e+00 : f32
    %cst_108 = arith.constant 0.000000e+00 : f32
    %519 = vector.broadcast %cst_107 : f32 to vector<4x2xf32>
    %520 = vector.broadcast %cst_108 : f32 to vector<4x2xf32>
    %521 = arith.select %518, %519, %520 : vector<4x2xi1>, vector<4x2xf32>
    %cst_109 = arith.constant dense<0xFF800000> : vector<4xf32>
    %522 = vector.multi_reduction <maximumf>, %521, %cst_109 [1] : vector<4x2xf32> to vector<4xf32>
    %523 = vector.shape_cast %522 : vector<4xf32> to vector<4x1xf32>
    %524 = vector.broadcast %468 : vector<1x2xf32> to vector<4x2xf32>
    %525 = arith.mulf %505, %524 : vector<4x2xf32>
    %526 = vector.broadcast %516 : vector<4x1xf32> to vector<4x2xf32>
    %527 = arith.mulf %526, %525 : vector<4x2xf32>
    %528 = arith.addf %501, %527 : vector<4x2xf32>
    %529 = vector.broadcast %469 : vector<1x2xf32> to vector<4x2xf32>
    %530 = arith.mulf %509, %529 : vector<4x2xf32>
    %531 = vector.broadcast %523 : vector<4x1xf32> to vector<4x2xf32>
    %532 = arith.mulf %531, %530 : vector<4x2xf32>
    %533 = arith.addf %528, %532 : vector<4x2xf32>
    %cst_110 = arith.constant 9.99999997E-7 : f32
    %534 = vector.broadcast %cst_110 : f32 to vector<4x1xf32>
    %535 = arith.cmpf olt, %466, %534 : vector<4x1xf32>
    %536 = arith.addf %475, %533 : vector<4x2xf32>
    %cst_111 = arith.constant 0.000000e+00 : f32
    %537 = vector.shape_cast %535 : vector<4x1xi1> to vector<4x1xi1>
    %538 = vector.broadcast %537 : vector<4x1xi1> to vector<4x2xi1>
    %539 = vector.broadcast %cst_111 : f32 to vector<4x2xf32>
    %540 = arith.select %538, %539, %536 : vector<4x2xi1>, vector<4x2xf32>
    %541 = tpu.concatenate %540, %475, %533 in 1 : vector<4x2xf32>, vector<4x2xf32>, vector<4x2xf32> -> vector<4x6xf32>
    %c0_112 = arith.constant 0 : index
    %c0_113 = arith.constant 0 : index
    %542 = vector.load %arg6[%c0_112, %c0_113] : memref<4x6xf32, #tpu.memory_space<vmem>>, vector<4x6xf32>
    tpu.vector_store %arg6[%c0_112, %c0_113], %541 {strides = array<i32>} : memref<4x6xf32, #tpu.memory_space<vmem>>, vector<4x6xf32>,
    return
  }
}

</mosaic_0001>

<bundles_post_ra>
// kernel: m_pcnn_forward.1
= control target key start
LH: loop header
LB: loop body
LE: loop exit
PB: predicated region body
PF: predicated region fallthrough
CT: control target
= control target key end

     0   :  { %vm53_vm0 = vcmask 1041408   ;;  %vm46_vm1 = vcmask 31744   ;;  %v2419_v10 = vmov 0.0   ;;  %vm2420_vm2 = vmmov 0   ;;  %s2422_s21 = smov 32   ;;  %s2423_s22 = smov 64   ;;  %s2890_s1 = inlined_call_operand.vmem [shape: bf16[2,4,32], index: 1, kind: input, shape index: {}]   ;;  %s2891_s0 = inlined_call_operand.vmem [shape: f32[2,32,4], index: 0, kind: input, shape index: {}]   ;;  %s2892_s2 = inlined_call_operand.vmem [shape: bf16[2,32,288], index: 2, kind: input, shape index: {}]   ;;  %s2893_s3 = inlined_call_operand.vmem [shape: f32[2,8,128], index: 3, kind: input, shape index: {}]   ;;  %s2894_s7 = inlined_call_operand.vmem [shape: f32[2,4,64], index: 7, kind: output, shape index: {1}]   ;;  %s2895_s4 = inlined_call_operand.vmem [shape: f32[4,4,2], index: 4, kind: input, shape index: {}]   ;;  %s2896_s5 = inlined_call_operand.vmem [shape: f32[8,2], index: 5, kind: input, shape index: {}]   ;;  %s2897_s6 = inlined_call_operand.vmem [shape: f32[4,6], index: 6, kind: output, shape index: {0}]  }
   0x1   :  { %v32_v0 = vld [vmem:[%s2890_s1] sm:$0x3]  ;;  %v27_v3 = vld [vmem:[%s2891_s0 + $0x8] sm:$0xff]  ;;  %v28_v4 = vld [vmem:[%s2891_s0 + $0x10] sm:$0xff]  ;;  %v2421_v13 = vmov 0   ;;  %v42_v14 = vlaneseq  ;;  %vm128_vm3 = vcmask 261120  }
   0x2   :  { %v26_v1 = vld [vmem:[%s2891_s0] sm:$0xff]  ;;  %2247 = vmatprep.subr.msk.bf16.mxu0 %vm53_vm0, %v32_v0  ;;  %v55_v2 = vsel %vm53_vm0, %v32_v0, 0  ;;  %v29_v5 = vld [vmem:[%s2891_s0 + $0x18] sm:$0xff]  ;;  %2258 = vset.pattern.permute.xlu0 %v2421_v13  ;;  %vm804_vm4 = vcmask 261124   ;;  %vm922_vm5 = vcmask 523268   ;;  %vm911_vm6 = vcmask 257024  }
   0x3   :  { %2076 = vmatpush3.bf16.msra.mxu0 %v55_v2  ;;  %v30_v6 = vpack.c.bf16 %v27_v3, %v26_v1  ;;  %v31_v7 = vpack.c.bf16 %v29_v5, %v28_v4  ;;  %v2262_v8 = vld [vmem:[%s2892_s2] ss:$12 sps:$4 sm:$0xff]   ;;  %v2493_v9 = vld [vmem:[%s2892_s2 + $0x4] ss:$12 sps:$4 sm:$0xff]   ;;  %v2504_v12 = vld [vmem:[%s2892_s2 + $0x1c] ss:$12 sps:$4 sm:$0xff]   ;;  %2259 = vset.pattern.permute.xlu1 %v2421_v13 }
   0x4   :  { %2081 = vmatprep.subr.bf16.mxu1 %v2262_v8  ;;  %2089 = vmatprep.subr.bf16.mxu0 %v2419_v10  ;;  %v2265_v11 = vld [vmem:[%s2892_s2 + $0x18] ss:$12 sps:$4 sm:$0xff]   ;;  %v2520_v15 = vshrl.u32 %v42_v14, 7  ;;  %vm1885_vm7 = vcmask 11264   ;;  %s2426_s13 = smov 4   ;;  %vm1821_vm11 = vcmask 7168  }
   0x5   :  { %2077 = vmatprep.mubr.msk.bf16.mxu0 %vm46_vm1, %v30_v6  ;;  %2082 = vmatpush3.bf16.msra.mxu1 %v2262_v8  ;;  %v2528_v17 = vld [vmem:[%s2893_s3] sm:$0xff]  ;;  %s2427_s14 = smov 2   ;;  %vm1923_vm13 = vcmask 15360   ;;  %vm1926_vm14 = vcmask 44032  }
   0x6   :  { %2078 = vmatmul.mubr.msk.bf16.vlgmr.msra.gmra.mrb[0].mxu0 %vm46_vm1, %v31_v7  ;;  %2083 = vmatprep.subr.bf16.mxu1 %v2265_v11  ;;  %v2523_v16 = vsub.s32 0, %v2520_v15  ;;  %v2541_v37 = vsub.s32 1, %v2520_v15 }
   0x7   :  { %2090 = vmatpush3.bf16.msra.mxu0 %v2493_v9  ;;  %2093 = vmatprep.mubr.msk.bf16.mxu0 %vm2420_vm2, %v2419_v10 }
   0x8   :  { %2091 = vmatprep.subr.bf16.mxu0 %v2419_v10  ;;  %v45_v18 = vrot.slane %v2528_v17, %v2523_v16  ;;  %v115_v38 = vrot.slane %v2528_v17, %v2541_v37 }
   0x9   :  { %2084 = vmatpush3.bf16.msra.mxu1 %v2265_v11 }
   0xa   :  { %2097 = vmatprep.subr.bf16.mxu1 %v2419_v10 }
   0xb   :  { %2092 = vmatpush3.bf16.msra.mxu0 %v2504_v12 }
   0xc   :  { %2105 = vmatprep.subr.bf16.mxu0 %v2419_v10 }
   0xe   :  { %2094 = vmatmul.mubr.bf16.vlgmr.msra.gmra.mrb[4].mxu0 %v2421_v13 }
   0xf   :  { %2106 = vmatpush3.bf16.msra.mxu0 %v2493_v9  ;;  %2109 = vmatprep.mubr.msk.bf16.mxu0 %vm2420_vm2, %v2419_v10 }
  0x10   :  { %2107 = vmatprep.subr.bf16.mxu0 %v2419_v10 }
  0x13   :  { %2108 = vmatpush3.bf16.msra.mxu0 %v2504_v12 }
  0x14   :  { %2121 = vmatprep.subr.bf16.mxu0 %v2419_v10 }
  0xd9   :  { %v2079_v19 = vpop.f32.mrb[0].mxu0 }
  0xda   :  { %v100_v20 = vadd.f32 %v2079_v19, %v45_v18  ;;  %v91_v21 = vpop.f32.mrb[1].mxu0 }
  0xdb   :  { %v92_v22 = vadd.f32 %v91_v21, %v45_v18  ;;  %v2080_v23 = vpop.f32.mrb[2].mxu0 }
  0xdc   :  { %v103_v24 = vadd.f32 %v2080_v23, %v45_v18  ;;  %v94_v25 = vpop.f32.mrb[3].mxu0  ;;  %v108_v27 = vmax.f32 %v100_v20, 0.0 }
  0xdd   :  { %v95_v26 = vadd.f32 %v94_v25, %v45_v18  ;;  %v106_v29 = vmax.f32 %v92_v22, 0.0 }
  0xde   :  { %v109_v28 = vmax.f32 %v103_v24, 0.0 }
  0xdf   :  { %v107_v30 = vmax.f32 %v95_v26, 0.0 }
  0xe0   :  { %v111_v31 = vpack.c.bf16 %v109_v28, %v108_v27 }
  0xe1   :  { %v110_v32 = vpack.c.bf16 %v107_v30, %v106_v29  ;;  %v229_v33 = vpop.f32.mrb[4].mxu0 }
  0xe2   :  { %v2095_v34 = vpop.f32.mrb[5].mxu0 }
  0xe3   :  { %2085 = vmatprep.mubr.msk.bf16.mxu1 %vm128_vm3, %v110_v32  ;;  %v232_v35 = vpop.f32.mrb[6].mxu0 }
  0xe4   :  { %2086 = vmatmul.mubr.msk.bf16.vlgmr.msra.gmra.mrb[0].mxu1 %vm128_vm3, %v111_v31  ;;  %v2096_v36 = vpop.f32.mrb[7].mxu0 }
  0xe5   :  { %2098 = vmatpush3.bf16.msra.mxu1 %v2493_v9  ;;  %2101 = vmatprep.mubr.msk.bf16.mxu1 %vm2420_vm2, %v2419_v10 }
  0xe6   :  { %2099 = vmatprep.subr.bf16.mxu1 %v2419_v10 }
  0xe9   :  { %2100 = vmatpush3.bf16.msra.mxu1 %v2504_v12 }
  0xea   :  { %2113 = vmatprep.subr.bf16.mxu1 %v2419_v10 }
 0x1b7   :  { %v2087_v39 = vpop.f32.mrb[0].mxu1 }
 0x1b8   :  { %v2545_v40 = vadd.f32 %v2087_v39, %v115_v38  ;;  %v169_v41 = vpop.f32.mrb[1].mxu1 }
 0x1b9   :  { %v170_v42 = vadd.f32 %v169_v41, %v115_v38  ;;  %v2088_v43 = vpop.f32.mrb[2].mxu1 }
 0x1ba   :  { %v2547_v44 = vadd.f32 %v2088_v43, %v115_v38  ;;  %v172_v45 = vpop.f32.mrb[3].mxu1 }
 0x1bb   :  { %v235_v46 = vadd.f32 %v229_v33, %v170_v42  ;;  %v2549_v47 = vadd.f32 %v172_v45, %v115_v38 }
 0x1bd   :  { %2278 = vtanh.f32 %v235_v46  ;;  %v1944_v49 = vmul.f32 -1.442695, %v235_v46 }
 0x1bf   :  { %2280 = vpow2.f32 %v1944_v49 }
 0x1c7   :  { %v2279_v48 = vpop.eup %2278 }
 0x1c8   :  { %245 = vrot.lane.b32.xlu0 %v2279_v48, %s2422_s21 }
 0x1c9   :  { %v2281_v50 = vpop.eup %2280 }
 0x1ca   :  { %v239_v51 = vadd.f32 1.0, %v2281_v50 }
 0x1cc   :  { %2282 = vrcp.f32 %v239_v51 }
 0x1d6   :  { %v2283_v52 = vpop.eup %2282 }
 0x1d7   :  { %v243_v55 = vmul.f32 0.0, %v2283_v52 }
 0x23a   :  { %v246_v53 = vpop.permute.xlu0 %245 }
 0x23b   :  { %v248_v54 = vmul.f32 %v2283_v52, %v246_v53 }
 0x23d   :  { %250 = vrot.lane.b32.xlu0 %v248_v54, %s2422_s21 }
 0x2af   :  { %v251_v56 = vpop.permute.xlu0 %250 }
 0x2b0   :  { %v253_v57 = vadd.f32 %v251_v56, %v243_v55 }
 0x2b2   :  { %2284 = vtanh.f32 %v253_v57  ;;  %v319_v19 = vrot.slane %v253_v57, 4 }
 0x2bc   :  { %v2285_v58 = vpop.eup %2284 }
 0x2bd   :  { %256 = vrot.lane.b32.xlu1 %v2285_v58, %s2422_s21 }
 0x32f   :  { %v257_v59 = vpop.permute.xlu1 %256 }
 0x330   :  { %v259_v60 = vmul.f32 %v2283_v52, %v257_v59 }
 0x332   :  { %v260_v61 = vpack.c.bf16 %v259_v60, %v259_v60 }
 0x334   :  { %262 = vrot.lane.b32.xlu1 %v260_v61, %s2423_s22 }
 0x3a6   :  { %v263_v62 = vpop.permute.xlu1 %262 }
 0x3a7   :  { %2102 = vmatmul.mubr.msk.bf16.vlgmr.msra.gmra.mrb[4].mxu1 %vm128_vm3, %v263_v62 }
 0x3a8   :  { %2114 = vmatpush3.bf16.msra.mxu1 %v2493_v9  ;;  %2117 = vmatprep.mubr.msk.bf16.mxu1 %vm2420_vm2, %v2419_v10 }
 0x3a9   :  { %2115 = vmatprep.subr.bf16.mxu1 %v2419_v10 }
 0x3ac   :  { %2116 = vmatpush3.bf16.msra.mxu1 %v2504_v12 }
 0x3ad   :  { %2129 = vmatprep.subr.bf16.mxu1 %v2419_v10 }
 0x47a   :  { %v301_v63 = vpop.f32.mrb[4].mxu1 }
 0x47b   :  { %v308_v0 = vrot.slane %v301_v63, 4  ;;  %v2103_v1 = vpop.f32.mrb[5].mxu1 }
 0x47c   :  { %v304_v2 = vpop.f32.mrb[6].mxu1 }
 0x47d   :  { %v310_v3 = vadd.f32 %v308_v0, %v170_v42  ;;  %v2104_v4 = vpop.f32.mrb[7].mxu1 }
 0x47f   :  { %2286 = vtanh.f32 %v310_v3  ;;  %v1946_v6 = vmul.f32 -1.442695, %v310_v3 }
 0x481   :  { %2288 = vpow2.f32 %v1946_v6 }
 0x489   :  { %v2287_v5 = vpop.eup %2286 }
 0x48a   :  { %323 = vrot.lane.b32.xlu0 %v2287_v5, %s2422_s21 }
 0x48b   :  { %v2289_v7 = vpop.eup %2288 }
 0x48c   :  { %v314_v8 = vadd.f32 1.0, %v2289_v7 }
 0x48e   :  { %2290 = vrcp.f32 %v314_v8 }
 0x498   :  { %v2291_v11 = vpop.eup %2290 }
 0x499   :  { %v321_v20 = vmul.f32 %v2291_v11, %v319_v19 }
 0x4fc   :  { %v324_v14 = vpop.permute.xlu0 %323 }
 0x4fd   :  { %v326_v18 = vmul.f32 %v2291_v11, %v324_v14 }
 0x4ff   :  { %328 = vrot.lane.b32.xlu1 %v326_v18, %s2422_s21 }
 0x571   :  { %v329_v21 = vpop.permute.xlu1 %328 }
 0x572   :  { %v331_v22 = vadd.f32 %v329_v21, %v321_v20 }
 0x574   :  { %2292 = vtanh.f32 %v331_v22  ;;  %v395_v43 = vrot.slane %v331_v22, 4 }
 0x57e   :  { %v2293_v23 = vpop.eup %2292 }
 0x57f   :  { %334 = vrot.lane.b32.xlu0 %v2293_v23, %s2422_s21 }
 0x5f1   :  { %v335_v24 = vpop.permute.xlu0 %334 }
 0x5f2   :  { %v337_v25 = vmul.f32 %v2291_v11, %v335_v24 }
 0x5f4   :  { %v338_v26 = vpack.c.bf16 %v337_v25, %v337_v25 }
 0x5f6   :  { %v340_v27 = vrot.slane %v338_v26, 2 }
 0x5f8   :  { %341 = vrot.lane.b32.xlu1 %v340_v27, %s2423_s22 }
 0x66a   :  { %v342_v28 = vpop.permute.xlu1 %341 }
 0x66b   :  { %2110 = vmatmul.mubr.msk.bf16.vlgmr.msra.gmra.mrb[8].mxu0 %vm128_vm3, %v342_v28 }
 0x66c   :  { %2122 = vmatpush3.bf16.msra.mxu0 %v2493_v9  ;;  %2125 = vmatprep.mubr.msk.bf16.mxu0 %vm2420_vm2, %v2419_v10 }
 0x66d   :  { %2123 = vmatprep.subr.bf16.mxu0 %v2419_v10 }
 0x670   :  { %2124 = vmatpush3.bf16.msra.mxu0 %v2504_v12 }
 0x671   :  { %2137 = vmatprep.subr.bf16.mxu0 %v2419_v10 }
 0x73e   :  { %v380_v29 = vpop.f32.mrb[8].mxu0 }
 0x73f   :  { %v386_v30 = vadd.f32 %v380_v29, %v2549_v47  ;;  %v2111_v31 = vpop.f32.mrb[9].mxu0 }
 0x740   :  { %v383_v32 = vpop.f32.mrb[10].mxu0 }
 0x741   :  { %2294 = vtanh.f32 %v386_v30  ;;  %v2112_v33 = vpop.f32.mrb[11].mxu0  ;;  %v1948_v35 = vmul.f32 -1.442695, %v386_v30 }
 0x743   :  { %2296 = vpow2.f32 %v1948_v35 }
 0x74b   :  { %v2295_v34 = vpop.eup %2294 }
 0x74c   :  { %399 = vrot.lane.b32.xlu0 %v2295_v34, %s2422_s21 }
 0x74d   :  { %v2297_v36 = vpop.eup %2296 }
 0x74e   :  { %v390_v38 = vadd.f32 1.0, %v2297_v36 }
 0x750   :  { %2298 = vrcp.f32 %v390_v38 }
 0x75a   :  { %v2299_v39 = vpop.eup %2298 }
 0x75b   :  { %v397_v45 = vmul.f32 %v2299_v39, %v395_v43 }
 0x7be   :  { %v400_v41 = vpop.permute.xlu0 %399 }
 0x7bf   :  { %v402_v42 = vmul.f32 %v2299_v39, %v400_v41 }
 0x7c1   :  { %404 = vrot.lane.b32.xlu1 %v402_v42, %s2422_s21  ;;  %v2610_v42 = vld [vmem:[%s2890_s1 + $0x2] sm:$0x3] }
 0x833   :  { %v405_v46 = vpop.permute.xlu1 %404 }
 0x834   :  { %v407_v48 = vadd.f32 %v405_v46, %v397_v45 }
 0x836   :  { %2300 = vtanh.f32 %v407_v48  ;;  %v473_v3 = vrot.slane %v407_v48, 4 }
 0x840   :  { %v2301_v49 = vpop.eup %2300 }
 0x841   :  { %410 = vrot.lane.b32.xlu0 %v2301_v49, %s2422_s21 }
 0x8b3   :  { %v411_v50 = vpop.permute.xlu0 %410 }
 0x8b4   :  { %v413_v51 = vmul.f32 %v2299_v39, %v411_v50 }
 0x8b6   :  { %v414_v52 = vpack.c.bf16 %v413_v51, %v413_v51 }
 0x8b8   :  { %416 = vrot.lane.b32.xlu1 %v414_v52, %s2423_s22 }
 0x92a   :  { %v417_v53 = vpop.permute.xlu1 %416 }
 0x92b   :  { %2118 = vmatmul.mubr.msk.bf16.vlgmr.msra.gmra.mrb[8].mxu1 %vm128_vm3, %v417_v53 }
 0x92c   :  { %2130 = vmatpush3.bf16.msra.mxu1 %v2493_v9  ;;  %2133 = vmatprep.mubr.msk.bf16.mxu1 %vm2420_vm2, %v2419_v10 }
 0x92d   :  { %2131 = vmatprep.subr.bf16.mxu1 %v2419_v10 }
 0x930   :  { %2132 = vmatpush3.bf16.msra.mxu1 %v2504_v12 }
 0x931   :  { %2145 = vmatprep.subr.bf16.mxu1 %v2419_v10 }
 0x9fe   :  { %v455_v54 = vpop.f32.mrb[8].mxu1 }
 0x9ff   :  { %v462_v55 = vrot.slane %v455_v54, 4  ;;  %v2119_v56 = vpop.f32.mrb[9].mxu1 }
 0xa00   :  { %v458_v57 = vpop.f32.mrb[10].mxu1 }
 0xa01   :  { %v464_v58 = vadd.f32 %v462_v55, %v2549_v47  ;;  %v2120_v59 = vpop.f32.mrb[11].mxu1 }
 0xa03   :  { %2302 = vtanh.f32 %v464_v58  ;;  %v1950_v61 = vmul.f32 -1.442695, %v464_v58 }
 0xa05   :  { %2304 = vpow2.f32 %v1950_v61 }
 0xa0d   :  { %v2303_v60 = vpop.eup %2302 }
 0xa0e   :  { %477 = vrot.lane.b32.xlu0 %v2303_v60, %s2422_s21 }
 0xa0f   :  { %v2305_v62 = vpop.eup %2304 }
 0xa10   :  { %v468_v63 = vadd.f32 1.0, %v2305_v62 }
 0xa12   :  { %2306 = vrcp.f32 %v468_v63 }
 0xa1c   :  { %v2307_v0 = vpop.eup %2306 }
 0xa1d   :  { %v475_v4 = vmul.f32 %v2307_v0, %v473_v3 }
 0xa80   :  { %v478_v1 = vpop.permute.xlu0 %477 }
 0xa81   :  { %v480_v2 = vmul.f32 %v2307_v0, %v478_v1 }
 0xa83   :  { %482 = vrot.lane.b32.xlu1 %v480_v2, %s2422_s21 }
 0xaf5   :  { %v483_v5 = vpop.permute.xlu1 %482 }
 0xaf6   :  { %v485_v6 = vadd.f32 %v483_v5, %v475_v4 }
 0xaf8   :  { %2308 = vtanh.f32 %v485_v6  ;;  %v549_v31 = vrot.slane %v485_v6, 4 }
 0xb02   :  { %v2309_v47 = vpop.eup %2308 }
 0xb03   :  { %488 = vrot.lane.b32.xlu0 %v2309_v47, %s2422_s21 }
 0xb75   :  { %v489_v7 = vpop.permute.xlu0 %488 }
 0xb76   :  { %v491_v8 = vmul.f32 %v2307_v0, %v489_v7 }
 0xb78   :  { %v492_v11 = vpack.c.bf16 %v491_v8, %v491_v8 }
 0xb7a   :  { %v494_v14 = vrot.slane %v492_v11, 2 }
 0xb7c   :  { %495 = vrot.lane.b32.xlu1 %v494_v14, %s2423_s22 }
 0xbee   :  { %v496_v18 = vpop.permute.xlu1 %495 }
 0xbef   :  { %2126 = vmatmul.mubr.msk.bf16.vlgmr.msra.gmra.mrb[12].mxu0 %vm128_vm3, %v496_v18 }
 0xbf0   :  { %2138 = vmatpush3.bf16.msra.mxu0 %v2493_v9  ;;  %2141 = vmatprep.mubr.msk.bf16.mxu0 %vm2420_vm2, %v2419_v10 }
 0xbf1   :  { %2139 = vmatprep.subr.bf16.mxu0 %v2419_v10 }
 0xbf4   :  { %2140 = vmatpush3.bf16.msra.mxu0 %v2504_v12 }
 0xbf5   :  { %2153 = vmatprep.subr.bf16.mxu0 %v2419_v10 }
 0xcc2   :  { %v534_v19 = vpop.f32.mrb[12].mxu0 }
 0xcc3   :  { %v540_v20 = vadd.f32 %v534_v19, %v2545_v40  ;;  %v2127_v21 = vpop.f32.mrb[13].mxu0 }
 0xcc4   :  { %v537_v22 = vpop.f32.mrb[14].mxu0 }
 0xcc5   :  { %2310 = vtanh.f32 %v540_v20  ;;  %v2128_v23 = vpop.f32.mrb[15].mxu0  ;;  %v1952_v25 = vmul.f32 -1.442695, %v540_v20 }
 0xcc7   :  { %2312 = vpow2.f32 %v1952_v25 }
 0xccf   :  { %v2311_v24 = vpop.eup %2310 }
 0xcd0   :  { %553 = vrot.lane.b32.xlu0 %v2311_v24, %s2422_s21 }
 0xcd1   :  { %v2313_v26 = vpop.eup %2312 }
 0xcd2   :  { %v544_v27 = vadd.f32 1.0, %v2313_v26 }
 0xcd4   :  { %2314 = vrcp.f32 %v544_v27 }
 0xcde   :  { %v2315_v28 = vpop.eup %2314 }
 0xcdf   :  { %v551_v32 = vmul.f32 %v2315_v28, %v549_v31 }
 0xd42   :  { %v554_v29 = vpop.permute.xlu0 %553 }
 0xd43   :  { %v556_v30 = vmul.f32 %v2315_v28, %v554_v29 }
 0xd45   :  { %558 = vrot.lane.b32.xlu1 %v556_v30, %s2422_s21 }
 0xdb7   :  { %v559_v33 = vpop.permute.xlu1 %558 }
 0xdb8   :  { %v561_v34 = vadd.f32 %v559_v33, %v551_v32 }
 0xdba   :  { %2316 = vtanh.f32 %v561_v34  ;;  %v627_v56 = vrot.slane %v561_v34, 4 }
 0xdc4   :  { %v2317_v35 = vpop.eup %2316 }
 0xdc5   :  { %564 = vrot.lane.b32.xlu0 %v2317_v35, %s2422_s21 }
 0xe37   :  { %v565_v36 = vpop.permute.xlu0 %564 }
 0xe38   :  { %v567_v38 = vmul.f32 %v2315_v28, %v565_v36 }
 0xe3a   :  { %v568_v39 = vpack.c.bf16 %v567_v38, %v567_v38 }
 0xe3c   :  { %570 = vrot.lane.b32.xlu1 %v568_v39, %s2423_s22 }
 0xeae   :  { %v571_v41 = vpop.permute.xlu1 %570 }
 0xeaf   :  { %2134 = vmatmul.mubr.msk.bf16.vlgmr.msra.gmra.mrb[12].mxu1 %vm128_vm3, %v571_v41 }
 0xeb0   :  { %2146 = vmatpush3.bf16.msra.mxu1 %v2493_v9  ;;  %2149 = vmatprep.mubr.msk.bf16.mxu1 %vm2420_vm2, %v2419_v10 }
 0xeb1   :  { %2147 = vmatprep.subr.bf16.mxu1 %v2419_v10 }
 0xeb4   :  { %2148 = vmatpush3.bf16.msra.mxu1 %v2504_v12 }
 0xeb5   :  { %2248 = vmatprep.subr.msk.bf16.mxu1 %vm53_vm0, %v2610_v42 }
 0xf82   :  { %v609_v43 = vpop.f32.mrb[12].mxu1 }
 0xf83   :  { %v616_v45 = vrot.slane %v609_v43, 4  ;;  %v2135_v46 = vpop.f32.mrb[13].mxu1 }
 0xf84   :  { %v612_v48 = vpop.f32.mrb[14].mxu1 }
 0xf85   :  { %v618_v9 = vadd.f32 %v616_v45, %v2545_v40  ;;  %v2136_v49 = vpop.f32.mrb[15].mxu1 }
 0xf87   :  { %2318 = vtanh.f32 %v618_v9  ;;  %v1954_v51 = vmul.f32 -1.442695, %v618_v9 }
 0xf89   :  { %2320 = vpow2.f32 %v1954_v51 }
 0xf91   :  { %v2319_v50 = vpop.eup %2318 }
 0xf92   :  { %631 = vrot.lane.b32.xlu0 %v2319_v50, %s2422_s21 }
 0xf93   :  { %v2321_v52 = vpop.eup %2320 }
 0xf94   :  { %v622_v53 = vadd.f32 1.0, %v2321_v52 }
 0xf96   :  { %2322 = vrcp.f32 %v622_v53 }
 0xfa0   :  { %v2323_v12 = vpop.eup %2322 }
 0xfa1   :  { %v629_v57 = vmul.f32 %v2323_v12, %v627_v56 }
0x1004   :  { %v632_v54 = vpop.permute.xlu0 %631 }
0x1005   :  { %v634_v55 = vmul.f32 %v2323_v12, %v632_v54 }
0x1007   :  { %636 = vrot.lane.b32.xlu1 %v634_v55, %s2422_s21 }
0x1079   :  { %v637_v58 = vpop.permute.xlu1 %636 }
0x107a   :  { %v639_v59 = vadd.f32 %v637_v58, %v629_v57 }
0x107c   :  { %2324 = vtanh.f32 %v639_v59  ;;  %v703_v19 = vrot.slane %v639_v59, 4  ;;  %v955_v59 = vsel %vm53_vm0, %v2610_v42, 0 }
0x1086   :  { %v2325_v40 = vpop.eup %2324 }
0x1087   :  { %642 = vrot.lane.b32.xlu0 %v2325_v40, %s2422_s21  ;;  %v1962_v40 = vld [vmem:[%s2891_s0 + $0x20] sm:$0xff] }
0x10f9   :  { %v643_v60 = vpop.permute.xlu0 %642 }
0x10fa   :  { %v645_v61 = vmul.f32 %v2323_v12, %v643_v60  ;;  %v2641_v12 = vsub.s32 2, %v2520_v15  ;;  %v1963_v60 = vld [vmem:[%s2891_s0 + $0x28] sm:$0xff] }
0x10fc   :  { %v646_v62 = vpack.c.bf16 %v645_v61, %v645_v61  ;;  %v826_v54 = vrot.slane %v2528_v17, %v2641_v12  ;;  %v1964_v61 = vld [vmem:[%s2891_s0 + $0x30] sm:$0xff] }
0x10fe   :  { %v648_v63 = vrot.slane %v646_v62, 2  ;;  %v929_v62 = vpack.c.bf16 %v1963_v60, %v1962_v40 }
0x1100   :  { %649 = vrot.lane.b32.xlu1 %v648_v63, %s2423_s22  ;;  %v1965_v63 = vld [vmem:[%s2891_s0 + $0x38] sm:$0xff] }
0x1172   :  { %v650_v0 = vpop.permute.xlu1 %649 }
0x1173   :  { %2142 = vmatmul.mubr.msk.bf16.vlgmr.msra.gmra.mrb[16].mxu0 %vm128_vm3, %v650_v0  ;;  %v930_v0 = vpack.c.bf16 %v1965_v63, %v1964_v61 }
0x1174   :  { %2157 = vmatprep.mubr.msk.bf16.mxu0 %vm2420_vm2, %v2419_v10 }
0x1246   :  { %v688_v1 = vpop.f32.mrb[16].mxu0 }
0x1247   :  { %v694_v2 = vadd.f32 %v688_v1, %v2547_v44  ;;  %v2143_v3 = vpop.f32.mrb[17].mxu0 }
0x1248   :  { %v691_v4 = vpop.f32.mrb[18].mxu0 }
0x1249   :  { %2326 = vtanh.f32 %v694_v2  ;;  %v2144_v5 = vpop.f32.mrb[19].mxu0  ;;  %v1956_v47 = vmul.f32 -1.442695, %v694_v2  ;;  %v2668_v2 = vsub.s32 3, %v2520_v15  ;;  %v2268_v4 = vld [vmem:[%s2892_s2 + $0x8] ss:$12 sps:$4 sm:$0xff]  }
0x124a   :  { %v2679_v5 = vld [vmem:[%s2892_s2 + $0x34] ss:$12 sps:$4 sm:$0xff]   ;;  %2154 = vmatpush3.bf16.msra.mxu0 %v2268_v4 }
0x124b   :  { %2328 = vpow2.f32 %v1956_v47  ;;  %v835_v3 = vrot.slane %v2528_v17, %v2668_v2  ;;  %2155 = vmatprep.subr.bf16.mxu0 %v2419_v10  ;;  %v2270_v17 = vld [vmem:[%s2892_s2 + $0x30] ss:$12 sps:$4 sm:$0xff]   ;;  %v2693_v47 = vld [vmem:[%s2893_s3 + $0x8] sm:$0xff] }
0x1253   :  { %v2327_v6 = vpop.eup %2326 }
0x1254   :  { %707 = vrot.lane.b32.xlu0 %v2327_v6, %s2422_s21  ;;  %v2269_v6 = vld [vmem:[%s2892_s2 + $0x20] ss:$12 sps:$4 sm:$0xff]  }
0x1255   :  { %v2329_v7 = vpop.eup %2328  ;;  %2156 = vmatpush3.bf16.msra.mxu0 %v2269_v6 }
0x1256   :  { %v698_v8 = vadd.f32 1.0, %v2329_v7  ;;  %2167 = vmatprep.subr.bf16.mxu0 %v2270_v17  ;;  %v947_v7 = vrot.slane %v2693_v47, %v2523_v16 }
0x1258   :  { %2330 = vrcp.f32 %v698_v8 }
0x1262   :  { %v2331_v11 = vpop.eup %2330 }
0x1263   :  { %v705_v20 = vmul.f32 %v2331_v11, %v703_v19 }
0x12c6   :  { %v708_v14 = vpop.permute.xlu0 %707 }
0x12c7   :  { %v710_v18 = vmul.f32 %v2331_v11, %v708_v14 }
0x12c9   :  { %712 = vrot.lane.b32.xlu1 %v710_v18, %s2422_s21 }
0x133b   :  { %v713_v21 = vpop.permute.xlu1 %712 }
0x133c   :  { %v715_v22 = vadd.f32 %v713_v21, %v705_v20 }
0x133e   :  { %2332 = vtanh.f32 %v715_v22  ;;  %v781_v45 = vrot.slane %v715_v22, 4 }
0x1348   :  { %v2333_v23 = vpop.eup %2332 }
0x1349   :  { %718 = vrot.lane.b32.xlu0 %v2333_v23, %s2422_s21 }
0x13bb   :  { %v719_v24 = vpop.permute.xlu0 %718 }
0x13bc   :  { %v721_v25 = vmul.f32 %v2331_v11, %v719_v24 }
0x13be   :  { %v722_v26 = vpack.c.bf16 %v721_v25, %v721_v25 }
0x13c0   :  { %724 = vrot.lane.b32.xlu1 %v722_v26, %s2423_s22 }
0x1432   :  { %v725_v27 = vpop.permute.xlu1 %724 }
0x1433   :  { %2150 = vmatmul.mubr.msk.bf16.vlgmr.msra.gmra.mrb[16].mxu1 %vm128_vm3, %v725_v27 }
0x1434   :  { %2162 = vmatpush3.bf16.msra.mxu1 %v955_v59  ;;  %2163 = vmatprep.mubr.msk.bf16.mxu1 %vm46_vm1, %v929_v62 }
0x1435   :  { %2175 = vmatprep.subr.bf16.mxu1 %v2419_v10 }
0x143b   :  { %2164 = vmatmul.mubr.msk.bf16.vlgmr.msra.gmra.mrb[20].mxu1 %vm46_vm1, %v930_v0 }
0x143c   :  { %2179 = vmatprep.mubr.msk.bf16.mxu1 %vm2420_vm2, %v2419_v10  ;;  %2176 = vmatpush3.bf16.msra.mxu1 %v2679_v5 }
0x143d   :  { %2177 = vmatprep.subr.bf16.mxu1 %v2419_v10 }
0x1506   :  { %v763_v28 = vpop.f32.mrb[16].mxu1 }
0x1507   :  { %v770_v29 = vrot.slane %v763_v28, 4  ;;  %v2151_v30 = vpop.f32.mrb[17].mxu1 }
0x1508   :  { %v766_v31 = vpop.f32.mrb[18].mxu1 }
0x1509   :  { %v772_v32 = vadd.f32 %v770_v29, %v2547_v44  ;;  %v2152_v33 = vpop.f32.mrb[19].mxu1 }
0x150b   :  { %2334 = vtanh.f32 %v772_v32  ;;  %v1958_v35 = vmul.f32 -1.442695, %v772_v32 }
0x150d   :  { %2336 = vpow2.f32 %v1958_v35 }
0x150e   :  { %v2165_v8 = vpop.f32.mrb[20].mxu1 }
0x150f   :  { %v1000_v11 = vadd.f32 %v2165_v8, %v947_v7  ;;  %v991_v14 = vpop.f32.mrb[21].mxu1 }
0x1510   :  { %v992_v18 = vadd.f32 %v991_v14, %v947_v7  ;;  %v2166_v19 = vpop.f32.mrb[22].mxu1 }
0x1511   :  { %v1008_v20 = vmax.f32 %v1000_v11, 0.0  ;;  %v1003_v21 = vadd.f32 %v2166_v19, %v947_v7  ;;  %v994_v22 = vpop.f32.mrb[23].mxu1 }
0x1512   :  { %v1006_v23 = vmax.f32 %v992_v18, 0.0  ;;  %v995_v24 = vadd.f32 %v994_v22, %v947_v7 }
0x1513   :  { %v1009_v25 = vmax.f32 %v1003_v21, 0.0 }
0x1514   :  { %v1007_v26 = vmax.f32 %v995_v24, 0.0 }
0x1515   :  { %v2335_v34 = vpop.eup %2334  ;;  %v1011_v27 = vpack.c.bf16 %v1009_v25, %v1008_v20 }
0x1516   :  { %785 = vrot.lane.b32.xlu0 %v2335_v34, %s2422_s21  ;;  %v1010_v28 = vpack.c.bf16 %v1007_v26, %v1006_v23  ;;  %v2700_v34 = vld [vmem:[%s2892_s2 + $0x4c] ss:$12 sps:$4 sm:$0xff]  }
0x1517   :  { %v2337_v36 = vpop.eup %2336  ;;  %2178 = vmatpush3.bf16.msra.mxu1 %v2700_v34 }
0x1518   :  { %v776_v38 = vadd.f32 1.0, %v2337_v36  ;;  %2191 = vmatprep.subr.bf16.mxu1 %v2419_v10 }
0x151a   :  { %2338 = vrcp.f32 %v776_v38  ;;  %2180 = vmatmul.mubr.bf16.vlgmr.msra.gmra.mrb[24].mxu1 %v2421_v13 }
0x151b   :  { %2192 = vmatpush3.bf16.msra.mxu1 %v2679_v5  ;;  %2195 = vmatprep.mubr.msk.bf16.mxu1 %vm2420_vm2, %v2419_v10 }
0x151c   :  { %2193 = vmatprep.subr.bf16.mxu1 %v2419_v10 }
0x151f   :  { %2194 = vmatpush3.bf16.msra.mxu1 %v2700_v34 }
0x1520   :  { %2207 = vmatprep.subr.bf16.mxu1 %v2419_v10 }
0x1524   :  { %v2339_v39 = vpop.eup %2338 }
0x1525   :  { %v783_v46 = vmul.f32 %v2339_v39, %v781_v45  ;;  %v2273_v45 = vld [vmem:[%s2892_s2 + $0x48] ss:$12 sps:$4 sm:$0xff]  }
0x1588   :  { %v786_v41 = vpop.permute.xlu0 %785 }
0x1589   :  { %v788_v43 = vmul.f32 %v2339_v39, %v786_v41 }
0x158b   :  { %790 = vrot.lane.b32.xlu1 %v788_v43, %s2422_s21 }
0x15fd   :  { %v791_v48 = vpop.permute.xlu1 %790 }
0x15fe   :  { %v793_v9 = vadd.f32 %v791_v48, %v783_v46  ;;  %v1125_v48 = vpop.f32.mrb[24].mxu1 }
0x1600   :  { %2340 = vtanh.f32 %v793_v9 }
0x160a   :  { %v2341_v44 = vpop.eup %2340 }
0x160b   :  { %796 = vrot.lane.b32.xlu0 %v2341_v44, %s2422_s21 }
0x167d   :  { %v797_v49 = vpop.permute.xlu0 %796 }
0x167e   :  { %v799_v50 = vmul.f32 %v2339_v39, %v797_v49 }
0x1680   :  { %801 = vrot.lane.b32.xlu1 %v799_v50, %s2423_s22 }
0x16f2   :  { %v802_v51 = vpop.permute.xlu1 %801 }
0x16f3   :  { %v921_v52 = vsel %vm128_vm3, %v802_v51, %v793_v9  ;;  %v805_v53 = vsel %vm804_vm4, %v802_v51, 0.0  ;;  %v2181_v9 = vpop.f32.mrb[25].mxu1 }
0x16f4   :  { %923 = vst.msk [vmem:[%s2894_s7 - $0x4] sm:$0xf0] %vm922_vm5, %v921_v52  ;;  %806 = vadd.xlane.f32.xlu0 %v805_v53  ;;  %v1128_v44 = vpop.f32.mrb[26].mxu1 }
0x16f5   :  { %v2182_v49 = vpop.f32.mrb[27].mxu1 }
0x170a   :  { %828 = vrot.lane.b32.xlu0 %v826_v54, %s2423_s22  ;;  %v1015_v54 = vrot.slane %v2693_v47, %v2541_v37 }
0x1781   :  { %v807_v55 = vpop.xlane.xlu0 %806 }
0x1782   :  { %v809_v56 = vmul.f32 0.03125, %v807_v55 }
0x1784   :  { %v810_v57 = vsub.f32 %v799_v50, %v809_v56 }
0x1785   :  { %v829_v33 = vpop.permute.xlu0 %828 }
0x1786   :  { %v811_v58 = vmul.f32 %v810_v57, %v810_v57 }
0x1788   :  { %813 = vrot.lane.b32.xlu1 %v811_v58, %s2423_s22 }
0x17fa   :  { %v814_v42 = vpop.permute.xlu1 %813 }
0x17fb   :  { %v816_v1 = vsel %vm804_vm4, %v814_v42, 0.0 }
0x17fc   :  { %817 = vadd.xlane.f32.xlu1 %v816_v1 }
0x180d   :  { %837 = vrot.lane.b32.xlu1 %v835_v3, %s2423_s22 }
0x1889   :  { %v818_v29 = vpop.xlane.xlu1 %817 }
0x188a   :  { %v819_v30 = vmul.f32 0.03125, %v818_v29 }
0x188c   :  { %v820_v31 = vadd.f32 1e-05, %v819_v30 }
0x188d   :  { %v838_v36 = vpop.permute.xlu1 %837 }
0x188e   :  { %2342 = vrsqrt.f32 %v820_v31 }
0x1898   :  { %v2343_v32 = vpop.eup %2342 }
0x1899   :  { %v822_v35 = vmul.f32 %v2343_v32, %v810_v57 }
0x189b   :  { %v831_v38 = vmul.f32 %v829_v33, %v822_v35 }
0x189d   :  { %v840_v39 = vadd.f32 %v838_v36, %v831_v38 }
0x189f   :  { %v841_v41 = vpack.c.bf16 %v840_v39, %v840_v39 }
0x18a1   :  { %v847_v43 = vrot.slane %v841_v41, 2 }
0x18a3   :  { %848 = vrot.lane.b32.xlu0 %v847_v43, %s2423_s22 }
0x1915   :  { %v849_v46 = vpop.permute.xlu0 %848 }
0x1916   :  { %2158 = vmatmul.mubr.msk.bf16.vlgmr.msra.gmra.mrb[20].mxu0 %vm128_vm3, %v849_v46 }
0x1917   :  { %2168 = vmatpush3.bf16.msra.mxu0 %v2270_v17  ;;  %2171 = vmatprep.mubr.msk.bf16.mxu0 %vm128_vm3, %v1010_v28 }
0x1918   :  { %2169 = vmatprep.subr.bf16.mxu0 %v2273_v45 }
0x191b   :  { %2170 = vmatpush3.bf16.msra.mxu0 %v2273_v45 }
0x191c   :  { %2183 = vmatprep.subr.bf16.mxu0 %v2419_v10 }
0x191e   :  { %2172 = vmatmul.mubr.msk.bf16.vlgmr.msra.gmra.mrb[24].mxu0 %vm128_vm3, %v1011_v27 }
0x191f   :  { %2184 = vmatpush3.bf16.msra.mxu0 %v2679_v5  ;;  %2187 = vmatprep.mubr.msk.bf16.mxu0 %vm2420_vm2, %v2419_v10 }
0x1920   :  { %2185 = vmatprep.subr.bf16.mxu0 %v2419_v10 }
0x1923   :  { %2186 = vmatpush3.bf16.msra.mxu0 %v2700_v34 }
0x1924   :  { %2199 = vmatprep.subr.bf16.mxu0 %v2419_v10 }
0x19e9   :  { %v2725_v50 = vpop.f32.mrb[20].mxu0 }
0x19ea   :  { %v2159_v51 = vpop.f32.mrb[21].mxu0 }
0x19eb   :  { %v902_v52 = vpop.f32.mrb[22].mxu0 }
0x19ec   :  { %v2160_v53 = vpop.f32.mrb[23].mxu0 }
0x19f1   :  { %v2173_v55 = vpop.f32.mrb[24].mxu0 }
0x19f2   :  { %v2729_v56 = vadd.f32 %v2173_v55, %v1015_v54  ;;  %v1068_v57 = vpop.f32.mrb[25].mxu0 }
0x19f3   :  { %v1069_v58 = vadd.f32 %v1068_v57, %v1015_v54  ;;  %v2174_v59 = vpop.f32.mrb[26].mxu0 }
0x19f4   :  { %v2731_v40 = vadd.f32 %v2174_v59, %v1015_v54  ;;  %v1071_v60 = vpop.f32.mrb[27].mxu0 }
0x19f5   :  { %v1131_v61 = vadd.f32 %v1125_v48, %v1069_v58  ;;  %v2733_v62 = vadd.f32 %v1071_v60, %v1015_v54 }
0x19f7   :  { %2344 = vtanh.f32 %v1131_v61  ;;  %v1984_v0 = vmul.f32 -1.442695, %v1131_v61 }
0x19f9   :  { %2346 = vpow2.f32 %v1984_v0 }
0x1a01   :  { %v2345_v63 = vpop.eup %2344 }
0x1a02   :  { %1141 = vrot.lane.b32.xlu0 %v2345_v63, %s2422_s21 }
0x1a03   :  { %v2347_v42 = vpop.eup %2346 }
0x1a04   :  { %v1135_v1 = vadd.f32 1.0, %v2347_v42 }
0x1a06   :  { %2348 = vrcp.f32 %v1135_v1 }
0x1a10   :  { %v2349_v3 = vpop.eup %2348 }
0x1a11   :  { %v1139_v17 = vmul.f32 0.0, %v2349_v3 }
0x1a74   :  { %v1142_v4 = vpop.permute.xlu0 %1141 }
0x1a75   :  { %v1144_v6 = vmul.f32 %v2349_v3, %v1142_v4 }
0x1a77   :  { %1146 = vrot.lane.b32.xlu1 %v1144_v6, %s2422_s21 }
0x1ae9   :  { %v1147_v7 = vpop.permute.xlu1 %1146 }
0x1aea   :  { %v1149_v8 = vadd.f32 %v1147_v7, %v1139_v17 }
0x1aec   :  { %2350 = vtanh.f32 %v1149_v8  ;;  %v1215_v35 = vrot.slane %v1149_v8, 4 }
0x1af6   :  { %v2351_v11 = vpop.eup %2350 }
0x1af7   :  { %1152 = vrot.lane.b32.xlu0 %v2351_v11, %s2422_s21 }
0x1b69   :  { %v1153_v14 = vpop.permute.xlu0 %1152 }
0x1b6a   :  { %v1155_v18 = vmul.f32 %v2349_v3, %v1153_v14 }
0x1b6c   :  { %v1156_v19 = vpack.c.bf16 %v1155_v18, %v1155_v18 }
0x1b6e   :  { %1158 = vrot.lane.b32.xlu1 %v1156_v19, %s2423_s22 }
0x1be0   :  { %v1159_v20 = vpop.permute.xlu1 %1158 }
0x1be1   :  { %2188 = vmatmul.mubr.msk.bf16.vlgmr.msra.gmra.mrb[28].mxu0 %vm128_vm3, %v1159_v20 }
0x1be2   :  { %2200 = vmatpush3.bf16.msra.mxu0 %v2679_v5  ;;  %2203 = vmatprep.mubr.msk.bf16.mxu0 %vm2420_vm2, %v2419_v10 }
0x1be3   :  { %2201 = vmatprep.subr.bf16.mxu0 %v2419_v10 }
0x1be6   :  { %2202 = vmatpush3.bf16.msra.mxu0 %v2700_v34 }
0x1be7   :  { %2215 = vmatprep.subr.bf16.mxu0 %v2419_v10 }
0x1cb4   :  { %v1197_v21 = vpop.f32.mrb[28].mxu0 }
0x1cb5   :  { %v1204_v22 = vrot.slane %v1197_v21, 4  ;;  %v2189_v23 = vpop.f32.mrb[29].mxu0 }
0x1cb6   :  { %v1200_v24 = vpop.f32.mrb[30].mxu0 }
0x1cb7   :  { %v1206_v25 = vadd.f32 %v1204_v22, %v1069_v58  ;;  %v2190_v26 = vpop.f32.mrb[31].mxu0 }
0x1cb9   :  { %2352 = vtanh.f32 %v1206_v25  ;;  %v1986_v28 = vmul.f32 -1.442695, %v1206_v25 }
0x1cbb   :  { %2354 = vpow2.f32 %v1986_v28 }
0x1cc3   :  { %v2353_v27 = vpop.eup %2352 }
0x1cc4   :  { %1219 = vrot.lane.b32.xlu0 %v2353_v27, %s2422_s21 }
0x1cc5   :  { %v2355_v29 = vpop.eup %2354 }
0x1cc6   :  { %v1210_v30 = vadd.f32 1.0, %v2355_v29 }
0x1cc8   :  { %2356 = vrcp.f32 %v1210_v30 }
0x1cd2   :  { %v2357_v31 = vpop.eup %2356 }
0x1cd3   :  { %v1217_v36 = vmul.f32 %v2357_v31, %v1215_v35 }
0x1d36   :  { %v1220_v32 = vpop.permute.xlu0 %1219 }
0x1d37   :  { %v1222_v33 = vmul.f32 %v2357_v31, %v1220_v32 }
0x1d39   :  { %1224 = vrot.lane.b32.xlu1 %v1222_v33, %s2422_s21 }
0x1dab   :  { %v1225_v38 = vpop.permute.xlu1 %1224 }
0x1dac   :  { %v1227_v39 = vadd.f32 %v1225_v38, %v1217_v36 }
0x1dae   :  { %2358 = vtanh.f32 %v1227_v39  ;;  %v1291_v63 = vrot.slane %v1227_v39, 4 }
0x1db8   :  { %v2359_v41 = vpop.eup %2358 }
0x1db9   :  { %1230 = vrot.lane.b32.xlu0 %v2359_v41, %s2422_s21 }
0x1e2b   :  { %v1231_v43 = vpop.permute.xlu0 %1230 }
0x1e2c   :  { %v1233_v45 = vmul.f32 %v2357_v31, %v1231_v43 }
0x1e2e   :  { %v1234_v46 = vpack.c.bf16 %v1233_v45, %v1233_v45 }
0x1e30   :  { %v1236_v48 = vrot.slane %v1234_v46, 2 }
0x1e32   :  { %1237 = vrot.lane.b32.xlu1 %v1236_v48, %s2423_s22 }
0x1ea4   :  { %v1238_v9 = vpop.permute.xlu1 %1237 }
0x1ea5   :  { %2196 = vmatmul.mubr.msk.bf16.vlgmr.msra.gmra.mrb[28].mxu1 %vm128_vm3, %v1238_v9 }
0x1ea6   :  { %2208 = vmatpush3.bf16.msra.mxu1 %v2679_v5  ;;  %2211 = vmatprep.mubr.msk.bf16.mxu1 %vm2420_vm2, %v2419_v10 }
0x1ea7   :  { %2209 = vmatprep.subr.bf16.mxu1 %v2419_v10 }
0x1eaa   :  { %2210 = vmatpush3.bf16.msra.mxu1 %v2700_v34 }
0x1eab   :  { %2223 = vmatprep.subr.bf16.mxu1 %v2419_v10 }
0x1f78   :  { %v1276_v44 = vpop.f32.mrb[28].mxu1 }
0x1f79   :  { %v1282_v49 = vadd.f32 %v1276_v44, %v2733_v62  ;;  %v2197_v51 = vpop.f32.mrb[29].mxu1 }
0x1f7a   :  { %v1279_v52 = vpop.f32.mrb[30].mxu1 }
0x1f7b   :  { %2360 = vtanh.f32 %v1282_v49  ;;  %v2198_v53 = vpop.f32.mrb[31].mxu1  ;;  %v1988_v55 = vmul.f32 -1.442695, %v1282_v49 }
0x1f7d   :  { %2362 = vpow2.f32 %v1988_v55 }
0x1f85   :  { %v2361_v54 = vpop.eup %2360 }
0x1f86   :  { %1295 = vrot.lane.b32.xlu0 %v2361_v54, %s2422_s21 }
0x1f87   :  { %v2363_v57 = vpop.eup %2362 }
0x1f88   :  { %v1286_v58 = vadd.f32 1.0, %v2363_v57 }
0x1f8a   :  { %2364 = vrcp.f32 %v1286_v58 }
0x1f94   :  { %v2365_v59 = vpop.eup %2364 }
0x1f95   :  { %v1293_v0 = vmul.f32 %v2365_v59, %v1291_v63 }
0x1ff8   :  { %v1296_v60 = vpop.permute.xlu0 %1295 }
0x1ff9   :  { %v1298_v61 = vmul.f32 %v2365_v59, %v1296_v60 }
0x1ffb   :  { %1300 = vrot.lane.b32.xlu1 %v1298_v61, %s2422_s21 }
0x206d   :  { %v1301_v42 = vpop.permute.xlu1 %1300 }
0x206e   :  { %v1303_v1 = vadd.f32 %v1301_v42, %v1293_v0 }
0x2070   :  { %2366 = vtanh.f32 %v1303_v1  ;;  %v1369_v28 = vrot.slane %v1303_v1, 4 }
0x207a   :  { %v2367_v3 = vpop.eup %2366 }
0x207b   :  { %1306 = vrot.lane.b32.xlu0 %v2367_v3, %s2422_s21 }
0x20ed   :  { %v1307_v4 = vpop.permute.xlu0 %1306 }
0x20ee   :  { %v1309_v6 = vmul.f32 %v2365_v59, %v1307_v4 }
0x20f0   :  { %v1310_v17 = vpack.c.bf16 %v1309_v6, %v1309_v6 }
0x20f2   :  { %1312 = vrot.lane.b32.xlu1 %v1310_v17, %s2423_s22 }
0x2164   :  { %v1313_v7 = vpop.permute.xlu1 %1312 }
0x2165   :  { %2204 = vmatmul.mubr.msk.bf16.vlgmr.msra.gmra.mrb[32].mxu0 %vm128_vm3, %v1313_v7 }
0x2166   :  { %2216 = vmatpush3.bf16.msra.mxu0 %v2679_v5  ;;  %2219 = vmatprep.mubr.msk.bf16.mxu0 %vm2420_vm2, %v2419_v10 }
0x2167   :  { %2217 = vmatprep.subr.bf16.mxu0 %v2419_v10 }
0x216a   :  { %2218 = vmatpush3.bf16.msra.mxu0 %v2700_v34 }
0x216b   :  { %2231 = vmatprep.subr.bf16.mxu0 %v2419_v10 }
0x2238   :  { %v1351_v8 = vpop.f32.mrb[32].mxu0 }
0x2239   :  { %v1358_v11 = vrot.slane %v1351_v8, 4  ;;  %v2205_v14 = vpop.f32.mrb[33].mxu0 }
0x223a   :  { %v1354_v18 = vpop.f32.mrb[34].mxu0 }
0x223b   :  { %v1360_v19 = vadd.f32 %v1358_v11, %v2733_v62  ;;  %v2206_v20 = vpop.f32.mrb[35].mxu0 }
0x223d   :  { %2368 = vtanh.f32 %v1360_v19  ;;  %v1990_v22 = vmul.f32 -1.442695, %v1360_v19 }
0x223f   :  { %2370 = vpow2.f32 %v1990_v22 }
0x2247   :  { %v2369_v21 = vpop.eup %2368 }
0x2248   :  { %1373 = vrot.lane.b32.xlu0 %v2369_v21, %s2422_s21 }
0x2249   :  { %v2371_v23 = vpop.eup %2370 }
0x224a   :  { %v1364_v24 = vadd.f32 1.0, %v2371_v23 }
0x224c   :  { %2372 = vrcp.f32 %v1364_v24 }
0x2256   :  { %v2373_v25 = vpop.eup %2372 }
0x2257   :  { %v1371_v29 = vmul.f32 %v2373_v25, %v1369_v28 }
0x22ba   :  { %v1374_v26 = vpop.permute.xlu0 %1373 }
0x22bb   :  { %v1376_v27 = vmul.f32 %v2373_v25, %v1374_v26 }
0x22bd   :  { %1378 = vrot.lane.b32.xlu1 %v1376_v27, %s2422_s21 }
0x232f   :  { %v1379_v30 = vpop.permute.xlu1 %1378 }
0x2330   :  { %v1381_v31 = vadd.f32 %v1379_v30, %v1371_v29 }
0x2332   :  { %2374 = vtanh.f32 %v1381_v31  ;;  %v1445_v54 = vrot.slane %v1381_v31, 4 }
0x233c   :  { %v2375_v62 = vpop.eup %2374 }
0x233d   :  { %1384 = vrot.lane.b32.xlu0 %v2375_v62, %s2422_s21 }
0x23af   :  { %v1385_v32 = vpop.permute.xlu0 %1384 }
0x23b0   :  { %v1387_v33 = vmul.f32 %v2373_v25, %v1385_v32 }
0x23b2   :  { %v1388_v35 = vpack.c.bf16 %v1387_v33, %v1387_v33 }
0x23b4   :  { %v1390_v36 = vrot.slane %v1388_v35, 2 }
0x23b6   :  { %1391 = vrot.lane.b32.xlu1 %v1390_v36, %s2423_s22 }
0x2428   :  { %v1392_v38 = vpop.permute.xlu1 %1391 }
0x2429   :  { %2212 = vmatmul.mubr.msk.bf16.vlgmr.msra.gmra.mrb[32].mxu1 %vm128_vm3, %v1392_v38 }
0x242a   :  { %2224 = vmatpush3.bf16.msra.mxu1 %v2679_v5  ;;  %2227 = vmatprep.mubr.msk.bf16.mxu1 %vm2420_vm2, %v2419_v10 }
0x242b   :  { %2225 = vmatprep.subr.bf16.mxu1 %v2419_v10 }
0x242e   :  { %2226 = vmatpush3.bf16.msra.mxu1 %v2700_v34 }
0x242f   :  { %2239 = vmatprep.subr.bf16.mxu1 %v2419_v10 }
0x24fc   :  { %v1430_v39 = vpop.f32.mrb[32].mxu1 }
0x24fd   :  { %v1436_v41 = vadd.f32 %v1430_v39, %v2729_v56  ;;  %v2213_v43 = vpop.f32.mrb[33].mxu1 }
0x24fe   :  { %v1433_v45 = vpop.f32.mrb[34].mxu1 }
0x24ff   :  { %2376 = vtanh.f32 %v1436_v41  ;;  %v2214_v46 = vpop.f32.mrb[35].mxu1  ;;  %v1992_v9 = vmul.f32 -1.442695, %v1436_v41 }
0x2501   :  { %2378 = vpow2.f32 %v1992_v9 }
0x2509   :  { %v2377_v48 = vpop.eup %2376 }
0x250a   :  { %1449 = vrot.lane.b32.xlu0 %v2377_v48, %s2422_s21 }
0x250b   :  { %v2379_v44 = vpop.eup %2378 }
0x250c   :  { %v1440_v49 = vadd.f32 1.0, %v2379_v44 }
0x250e   :  { %2380 = vrcp.f32 %v1440_v49 }
0x2518   :  { %v2381_v51 = vpop.eup %2380 }
0x2519   :  { %v1447_v55 = vmul.f32 %v2381_v51, %v1445_v54 }
0x257c   :  { %v1450_v52 = vpop.permute.xlu0 %1449 }
0x257d   :  { %v1452_v53 = vmul.f32 %v2381_v51, %v1450_v52 }
0x257f   :  { %1454 = vrot.lane.b32.xlu1 %v1452_v53, %s2422_s21 }
0x25f1   :  { %v1455_v57 = vpop.permute.xlu1 %1454 }
0x25f2   :  { %v1457_v58 = vadd.f32 %v1455_v57, %v1447_v55 }
0x25f4   :  { %2382 = vtanh.f32 %v1457_v58 }
0x25fe   :  { %v2383_v59 = vpop.eup %2382 }
0x25ff   :  { %1460 = vrot.lane.b32.xlu0 %v2383_v59, %s2422_s21 }
0x2671   :  { %v1461_v60 = vpop.permute.xlu0 %1460 }
0x2672   :  { %v1463_v61 = vmul.f32 %v2381_v51, %v1461_v60 }
0x2674   :  { %v1464_v63 = vpack.c.bf16 %v1463_v61, %v1463_v61 }
0x2676   :  { %1466 = vrot.lane.b32.xlu1 %v1464_v63, %s2423_s22 }
0x26e8   :  { %v1467_v0 = vpop.permute.xlu1 %1466 }
0x26e9   :  { %2220 = vmatmul.mubr.msk.bf16.vlgmr.msra.gmra.mrb[36].mxu0 %vm128_vm3, %v1467_v0 }
0x26ea   :  { %2232 = vmatpush3.bf16.msra.mxu0 %v2679_v5  ;;  %2235 = vmatprep.mubr.msk.bf16.mxu0 %vm2420_vm2, %v2419_v10 }
0x26eb   :  { %2233 = vmatprep.subr.bf16.mxu0 %v2419_v10 }
0x26ee   :  { %2234 = vmatpush3.bf16.msra.mxu0 %v2700_v34  ;;  %v1523_v34 = vrot.slane %v1457_v58, 4 }
0x27bc   :  { %v1505_v42 = vpop.f32.mrb[36].mxu0 }
0x27bd   :  { %v1512_v1 = vrot.slane %v1505_v42, 4  ;;  %v2221_v3 = vpop.f32.mrb[37].mxu0 }
0x27be   :  { %v1508_v4 = vpop.f32.mrb[38].mxu0 }
0x27bf   :  { %v1514_v6 = vadd.f32 %v1512_v1, %v2729_v56  ;;  %v2222_v17 = vpop.f32.mrb[39].mxu0 }
0x27c1   :  { %2384 = vtanh.f32 %v1514_v6  ;;  %v1994_v8 = vmul.f32 -1.442695, %v1514_v6 }
0x27c3   :  { %2386 = vpow2.f32 %v1994_v8 }
0x27cb   :  { %v2385_v7 = vpop.eup %2384 }
0x27cc   :  { %1527 = vrot.lane.b32.xlu0 %v2385_v7, %s2422_s21 }
0x27cd   :  { %v2387_v5 = vpop.eup %2386 }
0x27ce   :  { %v1518_v11 = vadd.f32 1.0, %v2387_v5 }
0x27d0   :  { %2388 = vrcp.f32 %v1518_v11 }
0x27da   :  { %v2389_v14 = vpop.eup %2388 }
0x27db   :  { %v1525_v20 = vmul.f32 %v2389_v14, %v1523_v34 }
0x283e   :  { %v1528_v18 = vpop.permute.xlu0 %1527 }
0x283f   :  { %v1530_v19 = vmul.f32 %v2389_v14, %v1528_v18 }
0x2841   :  { %1532 = vrot.lane.b32.xlu1 %v1530_v19, %s2422_s21 }
0x28b3   :  { %v1533_v21 = vpop.permute.xlu1 %1532 }
0x28b4   :  { %v1535_v22 = vadd.f32 %v1533_v21, %v1525_v20 }
0x28b6   :  { %2390 = vtanh.f32 %v1535_v22  ;;  %v1599_v43 = vrot.slane %v1535_v22, 4  ;;  %v1720_v22 = vrot.slane %v2693_v47, %v2641_v12 }
0x28c0   :  { %v2391_v56 = vpop.eup %2390 }
0x28c1   :  { %1538 = vrot.lane.b32.xlu0 %v2391_v56, %s2422_s21 }
0x2933   :  { %v1539_v23 = vpop.permute.xlu0 %1538 }
0x2934   :  { %v1541_v24 = vmul.f32 %v2389_v14, %v1539_v23 }
0x2936   :  { %v1542_v25 = vpack.c.bf16 %v1541_v24, %v1541_v24  ;;  %v1729_v24 = vrot.slane %v2693_v47, %v2668_v2 }
0x2938   :  { %v1544_v26 = vrot.slane %v1542_v25, 2  ;;  %v844_v25 = vsub.s32 4, %v2520_v15 }
0x293a   :  { %1545 = vrot.lane.b32.xlu1 %v1544_v26, %s2423_s22  ;;  %v2829_v26 = vld [vmem:[%s2893_s3] sm:$0xff] }
0x29ac   :  { %v1546_v27 = vpop.permute.xlu1 %1545 }
0x29ad   :  { %2228 = vmatmul.mubr.msk.bf16.vlgmr.msra.gmra.mrb[36].mxu1 %vm128_vm3, %v1546_v27  ;;  %v845_v27 = vrot.slane %v2829_v26, %v844_v25 }
0x29ae   :  { %2243 = vmatprep.mubr.msk.bf16.mxu1 %vm2420_vm2, %v2419_v10 }
0x2a80   :  { %v1584_v28 = vpop.f32.mrb[36].mxu1 }
0x2a81   :  { %v1590_v29 = vadd.f32 %v1584_v28, %v2731_v40  ;;  %v2229_v30 = vpop.f32.mrb[37].mxu1  ;;  %v900_v28 = vadd.f32 %v2725_v50, %v845_v27  ;;  %v2277_v50 = vld [vmem:[%s2892_s2 + $0x50] ss:$12 sps:$4 sm:$0xff]  }
0x2a82   :  { %v1587_v31 = vpop.f32.mrb[38].mxu1 }
0x2a83   :  { %2392 = vtanh.f32 %v1590_v29  ;;  %v2230_v62 = vpop.f32.mrb[39].mxu1  ;;  %v1996_v33 = vmul.f32 -1.442695, %v1590_v29  ;;  %v2834_v29 = vsub.s32 5, %v2520_v15 }
0x2a85   :  { %2394 = vpow2.f32 %v1996_v33  ;;  %v909_v30 = vrot.slane %v2829_v26, %v2834_v29  ;;  %v2276_v33 = vld [vmem:[%s2892_s2 + $0x38] ss:$12 sps:$4 sm:$0xff]  }
0x2a86   :  { %2240 = vmatpush3.bf16.msra.mxu1 %v2276_v33 }
0x2a87   :  { %2241 = vmatprep.subr.bf16.mxu1 %v2419_v10 }
0x2a8a   :  { %2242 = vmatpush3.bf16.msra.mxu1 %v2277_v50 }
0x2a8d   :  { %v2393_v32 = vpop.eup %2392 }
0x2a8e   :  { %1603 = vrot.lane.b32.xlu0 %v2393_v32, %s2422_s21 }
0x2a8f   :  { %v2395_v35 = vpop.eup %2394 }
0x2a90   :  { %v1594_v36 = vadd.f32 1.0, %v2395_v35 }
0x2a92   :  { %2396 = vrcp.f32 %v1594_v36 }
0x2a9c   :  { %v2397_v38 = vpop.eup %2396 }
0x2a9d   :  { %v1601_v45 = vmul.f32 %v2397_v38, %v1599_v43 }
0x2b00   :  { %v1604_v39 = vpop.permute.xlu0 %1603 }
0x2b01   :  { %v1606_v41 = vmul.f32 %v2397_v38, %v1604_v39 }
0x2b03   :  { %1608 = vrot.lane.b32.xlu1 %v1606_v41, %s2422_s21 }
0x2b75   :  { %v1609_v46 = vpop.permute.xlu1 %1608 }
0x2b76   :  { %v1611_v48 = vadd.f32 %v1609_v46, %v1601_v45 }
0x2b78   :  { %2398 = vtanh.f32 %v1611_v48  ;;  %v1677_v4 = vrot.slane %v1611_v48, 4 }
0x2b82   :  { %v2399_v9 = vpop.eup %2398 }
0x2b83   :  { %1614 = vrot.lane.b32.xlu0 %v2399_v9, %s2422_s21 }
0x2bf5   :  { %v1615_v44 = vpop.permute.xlu0 %1614 }
0x2bf6   :  { %v1617_v49 = vmul.f32 %v2397_v38, %v1615_v44 }
0x2bf8   :  { %v1618_v51 = vpack.c.bf16 %v1617_v49, %v1617_v49 }
0x2bfa   :  { %1620 = vrot.lane.b32.xlu1 %v1618_v51, %s2423_s22  ;;  %v2003_v51 = vld [vmem:[%s2895_s4 + $0x4] sm:$0xf] }
0x2bfb   :  { %vm1880_vm8 = vcmp.gt.f32.partialorder %v2003_v51, 0.001  ;;  %vm1882_vm9 = vcmp.lt.f32.partialorder %v2003_v51, -0.001 }
0x2c6c   :  { %v1621_v52 = vpop.permute.xlu1 %1620 }
0x2c6d   :  { %2236 = vmatmul.mubr.msk.bf16.vlgmr.msra.gmra.mrb[40].mxu0 %vm128_vm3, %v1621_v52  ;;  %v1884_v52 = vsel %vm1880_vm8, 1.0, %v2419_v10 }
0x2d40   :  { %v1659_v53 = vpop.f32.mrb[40].mxu0 }
0x2d41   :  { %v1666_v54 = vrot.slane %v1659_v53, 4  ;;  %v2237_v55 = vpop.f32.mrb[41].mxu0  ;;  %v1889_v53 = vsel %vm1882_vm9, 1.0, %v2419_v10 }
0x2d42   :  { %v1662_v57 = vpop.f32.mrb[42].mxu0  ;;  %v1890_v55 = vsel %vm1885_vm7, %v1889_v53, -inf }
0x2d43   :  { %v1668_v58 = vadd.f32 %v1666_v54, %v2731_v40  ;;  %v2238_v59 = vpop.f32.mrb[43].mxu0  ;;  %v1886_v54 = vsel %vm1885_vm7, %v1884_v52, -inf  ;;  %v2858_v57 = vld [vmem:[%s2895_s4] sm:$0xf] }
0x2d44   :  { %v1830_v59 = vld [vmem:[%s2896_s5] sm:$0xff] }
0x2d45   :  { %2400 = vtanh.f32 %v1668_v58  ;;  %v1998_v61 = vmul.f32 -1.442695, %v1668_v58  ;;  %v2004_v58 = vld [vmem:[%s2895_s4 + $0x8] sm:$0xf]  ;;  %v1856_v27 = vrot.slane %v1830_v59, %v2641_v12 }
0x2d47   :  { %2402 = vpow2.f32 %v1998_v61  ;;  %v1840_v61 = vrot.slane %v1830_v59, %v2668_v2 }
0x2d4f   :  { %v2401_v60 = vpop.eup %2400 }
0x2d50   :  { %1681 = vrot.lane.b32.xlu0 %v2401_v60, %s2422_s21  ;;  %v1833_v60 = vadd.f32 %v2004_v58, %v2858_v57 }
0x2d51   :  { %v2403_v63 = vpop.eup %2402 }
0x2d52   :  { %v1672_v0 = vadd.f32 1.0, %v2403_v63  ;;  %v2006_v10 = vadd.f32 -0.1, %v1833_v60 }
0x2d54   :  { %2404 = vrcp.f32 %v1672_v0  ;;  %v1836_v63 = vmul.f32 1.25, %v2006_v10  ;;  %v1845_v0 = vrot.slane %v1830_v59, %v844_v25 }
0x2d5e   :  { %v2405_v42 = vpop.eup %2404 }
0x2d5f   :  { %v1679_v6 = vmul.f32 %v2405_v42, %v1677_v4  ;;  %v1739_v4 = vrot.slane %v2693_v47, %v844_v25  ;;  %v1896_v25 = vrot.slane %v1830_v59, %v2523_v16 }
0x2dc2   :  { %v1682_v1 = vpop.permute.xlu0 %1681 }
0x2dc3   :  { %v1684_v3 = vmul.f32 %v2405_v42, %v1682_v1 }
0x2dc5   :  { %1686 = vrot.lane.b32.xlu1 %v1684_v3, %s2422_s21  ;;  %v2424_v3 = vmov 1  }
0x2e37   :  { %v1687_v17 = vpop.permute.xlu1 %1686 }
0x2e38   :  { %v1689_v7 = vadd.f32 %v1687_v17, %v1679_v6 }
0x2e3a   :  { %2406 = vtanh.f32 %v1689_v7 }
0x2e3b   :  { %2408 = vtanh.f32 %v900_v28  ;;  %v1867_v28 = vrot.slane %v1830_v59, %v2834_v29 }
0x2e44   :  { %v2407_v40 = vpop.eup %2406 }
0x2e45   :  { %1692 = vrot.lane.b32.xlu0 %v2407_v40, %s2422_s21  ;;  %v2409_v31 = vpop.eup %2408 }
0x2e46   :  { %v910_v62 = vmul.f32 %v2409_v31, %v909_v30  ;;  %v1881_v30 = vsel %vm1880_vm8, %v2003_v51, 0.0 }
0x2e47   :  { %v1897_v50 = vmul.f32 %v1896_v25, %v1881_v30 }
0x2e48   :  { %v912_v32 = vsel %vm911_vm6, %v910_v62, 0.0  ;;  %v1903_v62 = vrot.slane %v1830_v59, %v2541_v37 }
0x2eb7   :  { %v1693_v8 = vpop.permute.xlu0 %1692 }
0x2eb8   :  { %v1695_v5 = vmul.f32 %v2405_v42, %v1693_v8  ;;  %v1841_v42 = vmul.f32 %v1840_v61, %v1836_v63 }
0x2eba   :  { %1697 = vrot.lane.b32.xlu1 %v1695_v5, %s2423_s22  ;;  %v1846_v1 = vadd.f32 %v1845_v0, %v1841_v42 }
0x2f2c   :  { %v1698_v11 = vpop.permute.xlu1 %1697 }
0x2f2d   :  { %v1814_v14 = vsel %vm128_vm3, %v1698_v11, %v1689_v7  ;;  %v1700_v18 = vsel %vm804_vm4, %v1698_v11, 0.0 }
0x2f2e   :  { %2002 = vst.msk [vmem:[%s2894_s7] sm:$0xf0] %vm922_vm5, %v1814_v14  ;;  %1701 = vadd.xlane.f32.xlu0 %v1700_v18  ;;  %v2005_v18 = vld [vmem:[%s2895_s4 + $0xc] sm:$0xf]  ;;  %s2425_s4 = smov 1  }
0x2f2f   :  { %vm1907_vm10 = vcmp.lt.f32.partialorder %v2005_v18, 1e-06 }
0x2f44   :  { %1722 = vrot.lane.b32.xlu0 %v1720_v22, %s2423_s22 }
0x2fbb   :  { %v1702_v19 = vpop.xlane.xlu0 %1701 }
0x2fbc   :  { %v1703_v34 = vmul.f32 0.03125, %v1702_v19 }
0x2fbe   :  { %v1704_v20 = vsub.f32 %v1695_v5, %v1703_v34  ;;  %v1803_v5 = vrot.slane %v2693_v47, %v2834_v29  ;;  %v1909_v29 = vsel %vm1907_vm10, 1, %v2421_v13 }
0x2fbf   :  { %v1723_v41 = vpop.permute.xlu0 %1722 }
0x2fc0   :  { %v1705_v21 = vmul.f32 %v1704_v20, %v1704_v20 }
0x2fc2   :  { %1707 = vrot.lane.b32.xlu1 %v1705_v21, %s2423_s22 }
0x3034   :  { %v1708_v56 = vpop.permute.xlu1 %1707 }
0x3035   :  { %v1710_v23 = vsel %vm804_vm4, %v1708_v56, 0.0 }
0x3036   :  { %1711 = vadd.xlane.f32.xlu1 %v1710_v23 }
0x3047   :  { %1731 = vrot.lane.b32.xlu1 %v1729_v24, %s2423_s22 }
0x306b   :  { %913 = vadd.xlane.f32.xlu1 %v912_v32 }
0x306f   :  { %1887 = vmax.xlane.f32.xlu1 %v1886_v54 }
0x3073   :  { %1891 = vmax.xlane.f32.xlu1 %v1890_v55 }
0x3084   :  { %1861 = vperm.xlu1 %2259, %v1846_v1  }
0x3088   :  { %2260 = vset.pattern.permute.xlu1 %v2424_v3 }
0x3089   :  { %1871 = vperm.xlu1 %2260, %v1846_v1  }
0x30c3   :  { %v1712_v35 = vpop.xlane.xlu1 %1711 }
0x30c4   :  { %v1713_v36 = vmul.f32 0.03125, %v1712_v35 }
0x30c6   :  { %v1714_v38 = vadd.f32 1e-05, %v1713_v36 }
0x30c7   :  { %v1732_v45 = vpop.permute.xlu1 %1731 }
0x30c8   :  { %2410 = vrsqrt.f32 %v1714_v38 }
0x30d2   :  { %v2411_v39 = vpop.eup %2410 }
0x30d3   :  { %v1716_v43 = vmul.f32 %v2411_v39, %v1704_v20  ;;  %v917_v20 = vsub.s32 6, %v2520_v15 }
0x30d5   :  { %v1725_v46 = vmul.f32 %v1723_v41, %v1716_v43  ;;  %v1811_v21 = vrot.slane %v2693_v47, %v917_v20  ;;  %v1877_v15 = vrot.slane %v1830_v59, %v917_v20  ;;  %v1883_v47 = vsel %vm1882_vm9, %v2003_v51, 0.0 }
0x30d6   :  { %v1904_v16 = vmul.f32 %v1903_v62, %v1883_v47 }
0x30d7   :  { %v1734_v48 = vadd.f32 %v1732_v45, %v1725_v46 }
0x30d9   :  { %v1735_v9 = vpack.c.bf16 %v1734_v48, %v1734_v48 }
0x30db   :  { %v1741_v44 = vrot.slane %v1735_v9, 2  ;;  %v918_v9 = vrot.slane %v2829_v26, %v917_v20 }
0x30dd   :  { %1742 = vrot.lane.b32.xlu0 %v1741_v44, %s2423_s22 }
0x30f8   :  { %v914_v19 = vpop.xlane.xlu1 %913 }
0x30f9   :  { %v919_v44 = vadd.f32 %v918_v9, %v914_v19 }
0x30fc   :  { %v1888_v34 = vpop.xlane.xlu1 %1887 }
0x30fd   :  { %v1898_v41 = vmul.f32 %v1897_v50, %v1888_v34 }
0x3100   :  { %v1892_v22 = vpop.xlane.xlu1 %1891 }
0x3101   :  { %v1905_v37 = vmul.f32 %v1904_v16, %v1892_v22 }
0x3104   :  { %v1862_v24 = vpop.permute.xlu1 %1861 }
0x3105   :  { %v1868_v36 = vmul.f32 %v1867_v28, %v1862_v24 }
0x3108   :  { %v1872_v33 = vpop.permute.xlu1 %1871 }
0x3109   :  { %v1878_v12 = vmul.f32 %v1877_v15, %v1872_v33 }
0x314f   :  { %v1743_v49 = vpop.permute.xlu0 %1742 }
0x3150   :  { %2244 = vmatmul.mubr.msk.bf16.vlgmr.msra.gmra.mrb[40].mxu1 %vm128_vm3, %v1743_v49 }
0x3223   :  { %v1793_v6 = vpop.f32.mrb[40].mxu1 }
0x3224   :  { %v1794_v17 = vadd.f32 %v1793_v6, %v1739_v4  ;;  %v2245_v7 = vpop.f32.mrb[41].mxu1 }
0x3225   :  { %v1796_v40 = vpop.f32.mrb[42].mxu1 }
0x3226   :  { %2412 = vtanh.f32 %v1794_v17  ;;  %v2246_v8 = vpop.f32.mrb[43].mxu1 }
0x3230   :  { %v2413_v2 = vpop.eup %2412 }
0x3231   :  { %v1804_v11 = vmul.f32 %v2413_v2, %v1803_v5 }
0x3233   :  { %v1805_v14 = vsel %vm911_vm6, %v1804_v11, 0.0 }
0x3234   :  { %1806 = vadd.xlane.f32.xlu0 %v1805_v14 }
0x324a   :  { %1849 = vperm.xlu0 %2258, %v2005_v18  }
0x324e   :  { %2261 = vset.pattern.permute.xlu0 %v2424_v3 }
0x32c1   :  { %v1807_v56 = vpop.xlane.xlu0 %1806 }
0x32c2   :  { %v1812_v23 = vadd.f32 %v1811_v21, %v1807_v56 }
0x32c4   :  { %2414 = vtanh.f32 %v1812_v23 }
0x32c5   :  { %2416 = vtanh.f32 %v919_v44 }
0x32c9   :  { %v1850_v31 = vpop.permute.xlu0 %1849 }
0x32ca   :  { %v1852_v32 = vsub.f32 %v1846_v1, %v1850_v31 }
0x32cc   :  { %v1857_v35 = vmul.f32 %v1856_v27, %v1852_v32 }
0x32ce   :  { %v2415_v38 = vpop.eup %2414  ;;  %v1858_v39 = vsub.f32 %v2004_v58, %v1857_v35 }
0x32cf   :  { %1818 = vrot.lane.b32.xlu1 %v2415_v38, %s2425_s4  ;;  %v2417_v49 = vpop.eup %2416 }
0x32d0   :  { %v1869_v43 = vadd.f32 %v1868_v36, %v1858_v39 }
0x32d2   :  { %v1879_v45 = vadd.f32 %v1878_v12, %v1869_v43 }
0x32d3   :  { %1911 = vperm.xlu1 %2260, %v1909_v29  }
0x32d4   :  { %v1899_v46 = vadd.f32 %v1898_v41, %v1879_v45 }
0x32d6   :  { %v1906_v48 = vadd.f32 %v1905_v37, %v1899_v46 }
0x32d8   :  { %1920 = vrot.lane.b32.xlu0 %v1906_v48, %s2426_s13 }
0x3341   :  { %v1819_v51 = vpop.permute.xlu1 %1818 }
0x3342   :  { %v1822_v52 = vsel %vm1821_vm11, %v2417_v49, %v1819_v51 }
0x3343   :  { %v1831_v53 = vmul.f32 0.1, %v1822_v52 }
0x3345   :  { %v1832_v13 = vadd.f32 %v1831_v53, %v2858_v57 }
0x3347   :  { %1916 = vrot.lane.b32.xlu1 %v1832_v13, %s2427_s14  ;;  %v1908_v55 = vadd.f32 %v1906_v48, %v1832_v13 }
0x334a   :  { %v1921_v60 = vpop.permute.xlu0 %1920 }
0x3352   :  { %v1912_v54 = vpop.permute.xlu1 %1911 }
0x3353   :  { %vm1913_vm12 = vcmp.eq.s32.totalorder %v1912_v54, 1 }
0x3354   :  { %v1914_v58 = vsel %vm1913_vm12, 0.0, %v1908_v55 }
0x33b9   :  { %v1917_v59 = vpop.permute.xlu1 %1916 }
0x33ba   :  { %v1924_v26 = vsel %vm1923_vm13, %v1914_v58, %v1917_v59 }
0x33bb   :  { %v1925_v10 = vsel %vm46_vm1, %v1924_v26, %v1921_v60 }
0x33bc   :  { %1927 = vst.msk [vmem:[%s2897_s6] sm:$0xf] %vm1926_vm14, %v1925_v10 }

</bundles_post_ra>
